<compile_context>
chip_gen: v7x
topology: tpu7x:2x2x1
jax: 0.10.0
libtpu: 0.0.40
codegen_flags: <defaults>
</compile_context>

<pallas_src>
import numpy as np
import jax
import jax.numpy as jnp
from jax import lax
from jax.experimental import pallas as pl
from jax.experimental.pallas import tpu as pltpu

D_MODEL = 64
NUM_HEADS = 8
HEAD_DIM = D_MODEL // NUM_HEADS
NUM_LAYERS = 2
FFN_DIM = D_MODEL * 4
MAX_POS = 50
EPS = 1e-5          # nn.LayerNorm default
NEG_INF = -1e9      # additive key-padding bias (exp underflows to 0 in f32)


# ----------------------------- kernel ---------------------------------------

def _layernorm(x, gamma, beta):
    mu = jnp.mean(x, axis=-1, keepdims=True)
    var = jnp.mean(jnp.square(x - mu), axis=-1, keepdims=True)
    return (x - mu) * jax.lax.rsqrt(var + EPS) * gamma + beta


def _fused_kernel(x_ref, mask_ref, pos_ref, wqkv_ref, bqkv_ref, wo_ref,
                  w1_ref, b1_ref, w2_ref, vec_ref, o_ref):
    D = D_MODEL

    # positional-encoding add (broadcast, pure VPU)
    x = x_ref[0] + pos_ref[...]                                  # (S, D)

    # key-padding additive bias for this batch element, shared by both layers.
    key_bias = jnp.where(mask_ref[0] > 0.5, 0.0, NEG_INF)        # (1, S) -> bcast (S, S)

    for l in range(NUM_LAYERS):                  # static unroll over 2 layers
        wqkv = wqkv_ref[l]                       # (D, 3D), Q columns pre-scaled
        bqkv = bqkv_ref[l]                       # (1, 3D)
        wo = wo_ref[l]                           # (D, D)
        w1 = w1_ref[l]                           # (D, F)
        b1 = b1_ref[l]                           # (1, F)
        w2 = w2_ref[l]                           # (F, D)
        vec = vec_ref[l]                         # (6, D): bo, b2, g1, be1, g2, be2
        bo, b2 = vec[0:1, :], vec[1:2, :]
        g1, be1 = vec[2:3, :], vec[3:4, :]
        g2, be2 = vec[4:5, :], vec[5:6, :]

        # fused QKV projection for all S rows of this batch element
        qkv = jnp.dot(x, wqkv, preferred_element_type=jnp.float32) + bqkv

        # multi-head attention; per-head outputs collected into one (S, D) slab,
        # output projection done ONCE after the head loop.
        ohs = []
        for h in range(NUM_HEADS):               # static unroll over 8 heads
            lo, hi = h * HEAD_DIM, (h + 1) * HEAD_DIM
            qh = qkv[:, lo:hi]                   # (S, hd), already 1/sqrt(hd)-scaled
            kh = qkv[:, D + lo:D + hi]           # (S, hd)
            vh = qkv[:, 2 * D + lo:2 * D + hi]   # (S, hd)
            # contract head dim of both operands -> no explicit kh.T transpose
            s = lax.dot_general(qh, kh, (((1,), (1,)), ((), ())),
                                preferred_element_type=jnp.float32) + key_bias
            m = jnp.max(s, axis=-1, keepdims=True)
            p = jnp.exp(s - m)
            inv = pl.reciprocal(jnp.sum(p, axis=-1, keepdims=True), approx=True)
            p = p * inv
            ohs.append(jnp.dot(p, vh, preferred_element_type=jnp.float32))
        attn_cat = jnp.concatenate(ohs, axis=-1)                        # (S, D)
        attn = jnp.dot(attn_cat, wo, preferred_element_type=jnp.float32) + bo

        # residual + LayerNorm1
        h1 = _layernorm(x + attn, g1, be1)

        # feed-forward: linear1 -> ReLU -> linear2, residual + LayerNorm2
        f = jnp.dot(h1, w1, preferred_element_type=jnp.float32) + b1
        f = jnp.maximum(f, 0.0)
        f = jnp.dot(f, w2, preferred_element_type=jnp.float32) + b2
        x = _layernorm(h1 + f, g2, be2)

    o_ref[0] = x.astype(o_ref.dtype)


# ----------------------------- wrapper ---------------------------------------

def semester_transformer_encoder(semester_representations, semester_masks,
                                 pos_enc, packed):
    """Matches SemesterTransformerEncoder.forward (eval mode)."""
    B, S, D = semester_representations.shape
    L = NUM_LAYERS
    F = FFN_DIM
    pos = pos_enc[:S]                                            # (S, D)
    mask = semester_masks.reshape(B, 1, S).astype(jnp.float32)   # (B, 1, S)

    out = pl.pallas_call(
        _fused_kernel,
        out_shape=jax.ShapeDtypeStruct((B, S, D), jnp.float32),
        grid=(B,),
        in_specs=[
            pl.BlockSpec((1, S, D), lambda b: (b, 0, 0)),          # x (per-batch block)
            pl.BlockSpec((1, 1, S), lambda b: (b, 0, 0)),          # mask (per-batch block)
            pl.BlockSpec((S, D), lambda b: (0, 0)),                # pos slice
            pl.BlockSpec((L, D, 3 * D), lambda b: (0, 0, 0)),      # wqkv_t
            pl.BlockSpec((L, 1, 3 * D), lambda b: (0, 0, 0)),      # bqkv
            pl.BlockSpec((L, D, D), lambda b: (0, 0, 0)),          # wo_t
            pl.BlockSpec((L, D, F), lambda b: (0, 0, 0)),          # w1_t
            pl.BlockSpec((L, 1, F), lambda b: (0, 0, 0)),          # b1
            pl.BlockSpec((L, F, D), lambda b: (0, 0, 0)),          # w2_t
            pl.BlockSpec((L, 6, D), lambda b: (0, 0, 0)),          # packed (1, D) vectors
        ],
        out_specs=pl.BlockSpec((1, S, D), lambda b: (b, 0, 0)),
        compiler_params=pltpu.CompilerParams(
            dimension_semantics=("parallel",)),                    # megacore on v7x
    )(semester_representations.astype(jnp.float32), mask, pos,
      packed["wqkv_t"], packed["bqkv"], packed["wo_t"],
      packed["w1_t"], packed["b1"], packed["w2_t"], packed["vec64"])
    return out


# ----------------------- deterministic parameter init ------------------------

def init_params(key):
    keys = jax.random.split(key, 1 + NUM_LAYERS)
    pos_enc = jax.random.normal(keys[0], (MAX_POS, D_MODEL), jnp.float32)
    layers = []
    for li in range(NUM_LAYERS):
        k = jax.random.split(keys[1 + li], 8)
        s = 0.05
        wqkv = jax.random.normal(k[0], (3 * D_MODEL, D_MODEL), jnp.float32) * s
        bqkv = jax.random.normal(k[1], (1, 3 * D_MODEL), jnp.float32) * s
        wo = jax.random.normal(k[2], (D_MODEL, D_MODEL), jnp.float32) * s
        bo = jax.random.normal(k[3], (1, D_MODEL), jnp.float32) * s
        w1 = jax.random.normal(k[4], (FFN_DIM, D_MODEL), jnp.float32) * s
        b1 = jax.random.normal(k[5], (1, FFN_DIM), jnp.float32) * s
        w2 = jax.random.normal(k[6], (D_MODEL, FFN_DIM), jnp.float32) * s
        b2 = jax.random.normal(k[7], (1, D_MODEL), jnp.float32) * s
        layers.append(dict(
            wqkv_t=wqkv.T, bqkv=bqkv, wo_t=wo.T, bo=bo,
            g1=jnp.ones((1, D_MODEL), jnp.float32),
            be1=jnp.zeros((1, D_MODEL), jnp.float32),
            w1_t=w1.T, b1=b1, w2_t=w2.T, b2=b2,
            g2=jnp.ones((1, D_MODEL), jnp.float32),
            be2=jnp.zeros((1, D_MODEL), jnp.float32),
        ))
    return pos_enc, layers


def pack_params(layers):
    """Stack per-layer weights, fold 1/sqrt(hd) into Q, pack the (1, D) vectors."""
    scale = 1.0 / float(np.sqrt(HEAD_DIM))

    def scale_qkv_w(w):   # (D, 3D): scale Q columns
        return jnp.concatenate([w[:, :D_MODEL] * scale, w[:, D_MODEL:]], axis=1)

    def scale_qkv_b(b):   # (1, 3D)
        return jnp.concatenate([b[:, :D_MODEL] * scale, b[:, D_MODEL:]], axis=1)

    return dict(
        wqkv_t=jnp.stack([scale_qkv_w(p["wqkv_t"]) for p in layers]),   # (L, D, 3D)
        bqkv=jnp.stack([scale_qkv_b(p["bqkv"]) for p in layers]),       # (L, 1, 3D)
        wo_t=jnp.stack([p["wo_t"] for p in layers]),                    # (L, D, D)
        w1_t=jnp.stack([p["w1_t"] for p in layers]),                    # (L, D, F)
        b1=jnp.stack([p["b1"] for p in layers]),                        # (L, 1, F)
        w2_t=jnp.stack([p["w2_t"] for p in layers]),                    # (L, F, D)
        vec64=jnp.stack([jnp.concatenate(
            [p["bo"], p["b2"], p["g1"], p["be1"], p["g2"], p["be2"]], axis=0)
            for p in layers]),                                          # (L, 6, D)
    )


# ----------------------------- pure-JAX reference ----------------------------

def reference_forward(x, masks, pos_enc, layers):
    B, S, D = x.shape
    hd = D // NUM_HEADS
    x = x + pos_enc[:S][None]
    key_bias = jnp.where(masks > 0.5, 0.0, NEG_INF)[:, None, None, :]   # (B,1,1,S)
    for p in layers:
        qkv = x @ p["wqkv_t"] + p["bqkv"]
        q, k, v = qkv[..., :D], qkv[..., D:2 * D], qkv[..., 2 * D:]
        split = lambda t: t.reshape(B, S, NUM_HEADS, hd).transpose(0, 2, 1, 3)
        qh, kh, vh = split(q), split(k), split(v)
        scores = (qh / np.sqrt(hd)) @ kh.transpose(0, 1, 3, 2) + key_bias
        attn = jax.nn.softmax(scores, axis=-1)
        ao = (attn @ vh).transpose(0, 2, 1, 3).reshape(B, S, D)
        ao = ao @ p["wo_t"] + p["bo"]
        h1 = _layernorm(x + ao, p["g1"], p["be1"])
        f = jnp.maximum(h1 @ p["w1_t"] + p["b1"], 0.0) @ p["w2_t"] + p["b2"]
        x = _layernorm(h1 + f, p["g2"], p["be2"])
    return x


# --------------------------------- main ---------------------------------------

if __name__ == "__main__":
    key = jax.random.PRNGKey(0)
    kx, kp = jax.random.split(key)

    B, S = 2, 8
    semester_representations = jax.random.normal(kx, (B, S, D_MODEL), jnp.float32)
    # semester_masks: 1.0 = valid semester, 0.0 = padded
    semester_masks = jnp.array([[1, 1, 1, 1, 1, 1, 1, 1],
                                [1, 1, 1, 1, 1, 0, 0, 0]], jnp.float32)

    pos_enc, layers = init_params(kp)
    packed = pack_params(layers)

    out = semester_transformer_encoder(semester_representations, semester_masks,
                                       pos_enc, packed)
    out = jax.block_until_ready(out)

    ref = reference_forward(semester_representations, semester_masks, pos_enc, layers)
    assert out.shape == (B, S, D_MODEL)
    # tolerance accommodates pl.reciprocal(approx=True) in the softmax denominator
    np.testing.assert_allclose(np.asarray(out), np.asarray(ref), rtol=2e-3, atol=2e-3)

    print("KERNEL_OK")
</pallas_src>

<mosaic_0001>
module attributes {stable_mosaic.version = 11 : i64} {
  func.func @_fused_kernel(%arg0: i32, %arg1: memref<1x8x64xf32, #tpu.memory_space<vmem>>, %arg2: memref<1x1x8xf32, #tpu.memory_space<vmem>>, %arg3: memref<8x64xf32, #tpu.memory_space<vmem>>, %arg4: memref<2x64x192xf32, #tpu.memory_space<vmem>>, %arg5: memref<2x1x192xf32, #tpu.memory_space<vmem>>, %arg6: memref<2x64x64xf32, #tpu.memory_space<vmem>>, %arg7: memref<2x64x256xf32, #tpu.memory_space<vmem>>, %arg8: memref<2x1x256xf32, #tpu.memory_space<vmem>>, %arg9: memref<2x256x64xf32, #tpu.memory_space<vmem>>, %arg10: memref<2x6x64xf32, #tpu.memory_space<vmem>>, %arg11: memref<1x8x64xf32, #tpu.memory_space<vmem>>) attributes {dimension_semantics = [#tpu.dimension_semantics<parallel>], iteration_bounds = array<i64: 2>, scalar_prefetch = 0 : i64, scratch_operands = 0 : i64, tpu.core_type = #tpu.core_type<tc>, window_params = [{transform_indices = @transform_0, window_bounds = array<i64: 1, 8, 64>}, {transform_indices = @transform_1, window_bounds = array<i64: 1, 1, 8>}, {pipeline_mode = #tpu.pipeline_mode<synchronous>, transform_indices = @transform_2, window_bounds = array<i64: 8, 64>}, {pipeline_mode = #tpu.pipeline_mode<synchronous>, transform_indices = @transform_3, window_bounds = array<i64: 2, 64, 192>}, {pipeline_mode = #tpu.pipeline_mode<synchronous>, transform_indices = @transform_4, window_bounds = array<i64: 2, 1, 192>}, {pipeline_mode = #tpu.pipeline_mode<synchronous>, transform_indices = @transform_5, window_bounds = array<i64: 2, 64, 64>}, {pipeline_mode = #tpu.pipeline_mode<synchronous>, transform_indices = @transform_6, window_bounds = array<i64: 2, 64, 256>}, {pipeline_mode = #tpu.pipeline_mode<synchronous>, transform_indices = @transform_7, window_bounds = array<i64: 2, 1, 256>}, {pipeline_mode = #tpu.pipeline_mode<synchronous>, transform_indices = @transform_8, window_bounds = array<i64: 2, 256, 64>}, {pipeline_mode = #tpu.pipeline_mode<synchronous>, transform_indices = @transform_9, window_bounds = array<i64: 2, 6, 64>}, {transform_indices = @transform_10, window_bounds = array<i64: 1, 8, 64>}]} {
    %c0 = arith.constant 0 : index
    %c0_0 = arith.constant 0 : index
    %c0_1 = arith.constant 0 : index
    %0 = vector.load %arg1[%c0, %c0_0, %c0_1] : memref<1x8x64xf32, #tpu.memory_space<vmem>>, vector<1x8x64xf32>
    %1 = vector.shape_cast %0 : vector<1x8x64xf32> to vector<8x64xf32>
    %c0_2 = arith.constant 0 : index
    %c0_3 = arith.constant 0 : index
    %2 = vector.load %arg3[%c0_2, %c0_3] : memref<8x64xf32, #tpu.memory_space<vmem>>, vector<8x64xf32>
    %3 = arith.addf %1, %2 : vector<8x64xf32>
    %c0_4 = arith.constant 0 : index
    %c0_5 = arith.constant 0 : index
    %c0_6 = arith.constant 0 : index
    %4 = vector.load %arg2[%c0_4, %c0_5, %c0_6] : memref<1x1x8xf32, #tpu.memory_space<vmem>>, vector<1x1x8xf32>
    %5 = vector.shape_cast %4 : vector<1x1x8xf32> to vector<1x8xf32>
    %cst = arith.constant 5.000000e-01 : f32
    %6 = vector.broadcast %cst : f32 to vector<1x8xf32>
    %7 = arith.cmpf ogt, %5, %6 : vector<1x8xf32>
    %cst_7 = arith.constant 0.000000e+00 : f32
    %cst_8 = arith.constant -1.000000e+09 : f32
    %8 = vector.broadcast %cst_7 : f32 to vector<1x8xf32>
    %9 = vector.broadcast %cst_8 : f32 to vector<1x8xf32>
    %10 = arith.select %7, %8, %9 : vector<1x8xi1>, vector<1x8xf32>
    %c0_9 = arith.constant 0 : index
    %c0_10 = arith.constant 0 : index
    %c0_11 = arith.constant 0 : index
    %11 = vector.load %arg4[%c0_9, %c0_10, %c0_11] : memref<2x64x192xf32, #tpu.memory_space<vmem>>, vector<1x64x192xf32>
    %12 = vector.shape_cast %11 : vector<1x64x192xf32> to vector<64x192xf32>
    %c0_12 = arith.constant 0 : index
    %c0_13 = arith.constant 0 : index
    %c0_14 = arith.constant 0 : index
    %13 = vector.load %arg5[%c0_12, %c0_13, %c0_14] : memref<2x1x192xf32, #tpu.memory_space<vmem>>, vector<1x1x192xf32>
    %14 = vector.shape_cast %13 : vector<1x1x192xf32> to vector<1x192xf32>
    %c0_15 = arith.constant 0 : index
    %c0_16 = arith.constant 0 : index
    %c0_17 = arith.constant 0 : index
    %15 = vector.load %arg6[%c0_15, %c0_16, %c0_17] : memref<2x64x64xf32, #tpu.memory_space<vmem>>, vector<1x64x64xf32>
    %16 = vector.shape_cast %15 : vector<1x64x64xf32> to vector<64x64xf32>
    %c0_18 = arith.constant 0 : index
    %c0_19 = arith.constant 0 : index
    %c0_20 = arith.constant 0 : index
    %17 = vector.load %arg7[%c0_18, %c0_19, %c0_20] : memref<2x64x256xf32, #tpu.memory_space<vmem>>, vector<1x64x256xf32>
    %18 = vector.shape_cast %17 : vector<1x64x256xf32> to vector<64x256xf32>
    %c0_21 = arith.constant 0 : index
    %c0_22 = arith.constant 0 : index
    %c0_23 = arith.constant 0 : index
    %19 = vector.load %arg8[%c0_21, %c0_22, %c0_23] : memref<2x1x256xf32, #tpu.memory_space<vmem>>, vector<1x1x256xf32>
    %20 = vector.shape_cast %19 : vector<1x1x256xf32> to vector<1x256xf32>
    %c0_24 = arith.constant 0 : index
    %c0_25 = arith.constant 0 : index
    %c0_26 = arith.constant 0 : index
    %21 = vector.load %arg9[%c0_24, %c0_25, %c0_26] : memref<2x256x64xf32, #tpu.memory_space<vmem>>, vector<1x256x64xf32>
    %22 = vector.shape_cast %21 : vector<1x256x64xf32> to vector<256x64xf32>
    %c0_27 = arith.constant 0 : index
    %c0_28 = arith.constant 0 : index
    %c0_29 = arith.constant 0 : index
    %23 = vector.load %arg10[%c0_27, %c0_28, %c0_29] : memref<2x6x64xf32, #tpu.memory_space<vmem>>, vector<1x6x64xf32>
    %24 = vector.shape_cast %23 : vector<1x6x64xf32> to vector<6x64xf32>
    %25 = vector.extract_strided_slice %24 {offsets = [0, 0], sizes = [1, 64], strides = [1, 1]} : vector<6x64xf32> to vector<1x64xf32>
    %26 = vector.extract_strided_slice %24 {offsets = [1, 0], sizes = [1, 64], strides = [1, 1]} : vector<6x64xf32> to vector<1x64xf32>
    %27 = vector.extract_strided_slice %24 {offsets = [2, 0], sizes = [1, 64], strides = [1, 1]} : vector<6x64xf32> to vector<1x64xf32>
    %28 = vector.extract_strided_slice %24 {offsets = [3, 0], sizes = [1, 64], strides = [1, 1]} : vector<6x64xf32> to vector<1x64xf32>
    %29 = vector.extract_strided_slice %24 {offsets = [4, 0], sizes = [1, 64], strides = [1, 1]} : vector<6x64xf32> to vector<1x64xf32>
    %30 = vector.extract_strided_slice %24 {offsets = [5, 0], sizes = [1, 64], strides = [1, 1]} : vector<6x64xf32> to vector<1x64xf32>
    %cst_30 = arith.constant dense<0.000000e+00> : vector<8x192xf32>
    %31 = tpu.matmul %3, %12, %cst_30 {dimension_numbers = #tpu.dot_dimension_numbers<[1], [0], [0], [1], [0, 0, 1, 1], [], []>} : vector<8x64xf32>, vector<64x192xf32>, vector<8x192xf32> -> vector<8x192xf32>
    %32 = vector.broadcast %14 : vector<1x192xf32> to vector<8x192xf32>
    %33 = arith.addf %31, %32 : vector<8x192xf32>
    %34 = vector.extract_strided_slice %33 {offsets = [0, 0], sizes = [8, 8], strides = [1, 1]} : vector<8x192xf32> to vector<8x8xf32>
    %35 = vector.extract_strided_slice %33 {offsets = [0, 64], sizes = [8, 8], strides = [1, 1]} : vector<8x192xf32> to vector<8x8xf32>
    %36 = vector.extract_strided_slice %33 {offsets = [0, 128], sizes = [8, 8], strides = [1, 1]} : vector<8x192xf32> to vector<8x8xf32>
    %cst_31 = arith.constant dense<0.000000e+00> : vector<8x8xf32>
    %37 = tpu.matmul %34, %35, %cst_31 {dimension_numbers = #tpu.dot_dimension_numbers<[1], [1], [0], [0], [0, 0, 1, 0], [], []>} : vector<8x8xf32>, vector<8x8xf32>, vector<8x8xf32> -> vector<8x8xf32>
    %38 = vector.broadcast %10 : vector<1x8xf32> to vector<8x8xf32>
    %39 = arith.addf %37, %38 : vector<8x8xf32>
    %cst_32 = arith.constant dense<0xFF800000> : vector<8xf32>
    %40 = vector.multi_reduction <maximumf>, %39, %cst_32 [1] : vector<8x8xf32> to vector<8xf32>
    %41 = vector.shape_cast %40 : vector<8xf32> to vector<8x1xf32>
    %42 = vector.broadcast %41 : vector<8x1xf32> to vector<8x8xf32>
    %43 = arith.subf %39, %42 : vector<8x8xf32>
    %44 = math.exp %43 : vector<8x8xf32>
    %cst_33 = arith.constant dense<0.000000e+00> : vector<8xf32>
    %45 = vector.multi_reduction <add>, %44, %cst_33 [1] : vector<8x8xf32> to vector<8xf32>
    %46 = vector.shape_cast %45 : vector<8xf32> to vector<8x1xf32>
    %47 = tpu.reciprocal %46 {approx = true} : vector<8x1xf32> -> vector<8x1xf32>
    %48 = vector.broadcast %47 : vector<8x1xf32> to vector<8x8xf32>
    %49 = arith.mulf %44, %48 : vector<8x8xf32>
    %cst_34 = arith.constant dense<0.000000e+00> : vector<8x8xf32>
    %50 = tpu.matmul %49, %36, %cst_34 {dimension_numbers = #tpu.dot_dimension_numbers<[1], [0], [0], [1], [0, 0, 1, 1], [], []>} : vector<8x8xf32>, vector<8x8xf32>, vector<8x8xf32> -> vector<8x8xf32>
    %51 = vector.extract_strided_slice %33 {offsets = [0, 8], sizes = [8, 8], strides = [1, 1]} : vector<8x192xf32> to vector<8x8xf32>
    %52 = vector.extract_strided_slice %33 {offsets = [0, 72], sizes = [8, 8], strides = [1, 1]} : vector<8x192xf32> to vector<8x8xf32>
    %53 = vector.extract_strided_slice %33 {offsets = [0, 136], sizes = [8, 8], strides = [1, 1]} : vector<8x192xf32> to vector<8x8xf32>
    %cst_35 = arith.constant dense<0.000000e+00> : vector<8x8xf32>
    %54 = tpu.matmul %51, %52, %cst_35 {dimension_numbers = #tpu.dot_dimension_numbers<[1], [1], [0], [0], [0, 0, 1, 0], [], []>} : vector<8x8xf32>, vector<8x8xf32>, vector<8x8xf32> -> vector<8x8xf32>
    %55 = vector.broadcast %10 : vector<1x8xf32> to vector<8x8xf32>
    %56 = arith.addf %54, %55 : vector<8x8xf32>
    %cst_36 = arith.constant dense<0xFF800000> : vector<8xf32>
    %57 = vector.multi_reduction <maximumf>, %56, %cst_36 [1] : vector<8x8xf32> to vector<8xf32>
    %58 = vector.shape_cast %57 : vector<8xf32> to vector<8x1xf32>
    %59 = vector.broadcast %58 : vector<8x1xf32> to vector<8x8xf32>
    %60 = arith.subf %56, %59 : vector<8x8xf32>
    %61 = math.exp %60 : vector<8x8xf32>
    %cst_37 = arith.constant dense<0.000000e+00> : vector<8xf32>
    %62 = vector.multi_reduction <add>, %61, %cst_37 [1] : vector<8x8xf32> to vector<8xf32>
    %63 = vector.shape_cast %62 : vector<8xf32> to vector<8x1xf32>
    %64 = tpu.reciprocal %63 {approx = true} : vector<8x1xf32> -> vector<8x1xf32>
    %65 = vector.broadcast %64 : vector<8x1xf32> to vector<8x8xf32>
    %66 = arith.mulf %61, %65 : vector<8x8xf32>
    %cst_38 = arith.constant dense<0.000000e+00> : vector<8x8xf32>
    %67 = tpu.matmul %66, %53, %cst_38 {dimension_numbers = #tpu.dot_dimension_numbers<[1], [0], [0], [1], [0, 0, 1, 1], [], []>} : vector<8x8xf32>, vector<8x8xf32>, vector<8x8xf32> -> vector<8x8xf32>
    %68 = vector.extract_strided_slice %33 {offsets = [0, 16], sizes = [8, 8], strides = [1, 1]} : vector<8x192xf32> to vector<8x8xf32>
    %69 = vector.extract_strided_slice %33 {offsets = [0, 80], sizes = [8, 8], strides = [1, 1]} : vector<8x192xf32> to vector<8x8xf32>
    %70 = vector.extract_strided_slice %33 {offsets = [0, 144], sizes = [8, 8], strides = [1, 1]} : vector<8x192xf32> to vector<8x8xf32>
    %cst_39 = arith.constant dense<0.000000e+00> : vector<8x8xf32>
    %71 = tpu.matmul %68, %69, %cst_39 {dimension_numbers = #tpu.dot_dimension_numbers<[1], [1], [0], [0], [0, 0, 1, 0], [], []>} : vector<8x8xf32>, vector<8x8xf32>, vector<8x8xf32> -> vector<8x8xf32>
    %72 = vector.broadcast %10 : vector<1x8xf32> to vector<8x8xf32>
    %73 = arith.addf %71, %72 : vector<8x8xf32>
    %cst_40 = arith.constant dense<0xFF800000> : vector<8xf32>
    %74 = vector.multi_reduction <maximumf>, %73, %cst_40 [1] : vector<8x8xf32> to vector<8xf32>
    %75 = vector.shape_cast %74 : vector<8xf32> to vector<8x1xf32>
    %76 = vector.broadcast %75 : vector<8x1xf32> to vector<8x8xf32>
    %77 = arith.subf %73, %76 : vector<8x8xf32>
    %78 = math.exp %77 : vector<8x8xf32>
    %cst_41 = arith.constant dense<0.000000e+00> : vector<8xf32>
    %79 = vector.multi_reduction <add>, %78, %cst_41 [1] : vector<8x8xf32> to vector<8xf32>
    %80 = vector.shape_cast %79 : vector<8xf32> to vector<8x1xf32>
    %81 = tpu.reciprocal %80 {approx = true} : vector<8x1xf32> -> vector<8x1xf32>
    %82 = vector.broadcast %81 : vector<8x1xf32> to vector<8x8xf32>
    %83 = arith.mulf %78, %82 : vector<8x8xf32>
    %cst_42 = arith.constant dense<0.000000e+00> : vector<8x8xf32>
    %84 = tpu.matmul %83, %70, %cst_42 {dimension_numbers = #tpu.dot_dimension_numbers<[1], [0], [0], [1], [0, 0, 1, 1], [], []>} : vector<8x8xf32>, vector<8x8xf32>, vector<8x8xf32> -> vector<8x8xf32>
    %85 = vector.extract_strided_slice %33 {offsets = [0, 24], sizes = [8, 8], strides = [1, 1]} : vector<8x192xf32> to vector<8x8xf32>
    %86 = vector.extract_strided_slice %33 {offsets = [0, 88], sizes = [8, 8], strides = [1, 1]} : vector<8x192xf32> to vector<8x8xf32>
    %87 = vector.extract_strided_slice %33 {offsets = [0, 152], sizes = [8, 8], strides = [1, 1]} : vector<8x192xf32> to vector<8x8xf32>
    %cst_43 = arith.constant dense<0.000000e+00> : vector<8x8xf32>
    %88 = tpu.matmul %85, %86, %cst_43 {dimension_numbers = #tpu.dot_dimension_numbers<[1], [1], [0], [0], [0, 0, 1, 0], [], []>} : vector<8x8xf32>, vector<8x8xf32>, vector<8x8xf32> -> vector<8x8xf32>
    %89 = vector.broadcast %10 : vector<1x8xf32> to vector<8x8xf32>
    %90 = arith.addf %88, %89 : vector<8x8xf32>
    %cst_44 = arith.constant dense<0xFF800000> : vector<8xf32>
    %91 = vector.multi_reduction <maximumf>, %90, %cst_44 [1] : vector<8x8xf32> to vector<8xf32>
    %92 = vector.shape_cast %91 : vector<8xf32> to vector<8x1xf32>
    %93 = vector.broadcast %92 : vector<8x1xf32> to vector<8x8xf32>
    %94 = arith.subf %90, %93 : vector<8x8xf32>
    %95 = math.exp %94 : vector<8x8xf32>
    %cst_45 = arith.constant dense<0.000000e+00> : vector<8xf32>
    %96 = vector.multi_reduction <add>, %95, %cst_45 [1] : vector<8x8xf32> to vector<8xf32>
    %97 = vector.shape_cast %96 : vector<8xf32> to vector<8x1xf32>
    %98 = tpu.reciprocal %97 {approx = true} : vector<8x1xf32> -> vector<8x1xf32>
    %99 = vector.broadcast %98 : vector<8x1xf32> to vector<8x8xf32>
    %100 = arith.mulf %95, %99 : vector<8x8xf32>
    %cst_46 = arith.constant dense<0.000000e+00> : vector<8x8xf32>
    %101 = tpu.matmul %100, %87, %cst_46 {dimension_numbers = #tpu.dot_dimension_numbers<[1], [0], [0], [1], [0, 0, 1, 1], [], []>} : vector<8x8xf32>, vector<8x8xf32>, vector<8x8xf32> -> vector<8x8xf32>
    %102 = vector.extract_strided_slice %33 {offsets = [0, 32], sizes = [8, 8], strides = [1, 1]} : vector<8x192xf32> to vector<8x8xf32>
    %103 = vector.extract_strided_slice %33 {offsets = [0, 96], sizes = [8, 8], strides = [1, 1]} : vector<8x192xf32> to vector<8x8xf32>
    %104 = vector.extract_strided_slice %33 {offsets = [0, 160], sizes = [8, 8], strides = [1, 1]} : vector<8x192xf32> to vector<8x8xf32>
    %cst_47 = arith.constant dense<0.000000e+00> : vector<8x8xf32>
    %105 = tpu.matmul %102, %103, %cst_47 {dimension_numbers = #tpu.dot_dimension_numbers<[1], [1], [0], [0], [0, 0, 1, 0], [], []>} : vector<8x8xf32>, vector<8x8xf32>, vector<8x8xf32> -> vector<8x8xf32>
    %106 = vector.broadcast %10 : vector<1x8xf32> to vector<8x8xf32>
    %107 = arith.addf %105, %106 : vector<8x8xf32>
    %cst_48 = arith.constant dense<0xFF800000> : vector<8xf32>
    %108 = vector.multi_reduction <maximumf>, %107, %cst_48 [1] : vector<8x8xf32> to vector<8xf32>
    %109 = vector.shape_cast %108 : vector<8xf32> to vector<8x1xf32>
    %110 = vector.broadcast %109 : vector<8x1xf32> to vector<8x8xf32>
    %111 = arith.subf %107, %110 : vector<8x8xf32>
    %112 = math.exp %111 : vector<8x8xf32>
    %cst_49 = arith.constant dense<0.000000e+00> : vector<8xf32>
    %113 = vector.multi_reduction <add>, %112, %cst_49 [1] : vector<8x8xf32> to vector<8xf32>
    %114 = vector.shape_cast %113 : vector<8xf32> to vector<8x1xf32>
    %115 = tpu.reciprocal %114 {approx = true} : vector<8x1xf32> -> vector<8x1xf32>
    %116 = vector.broadcast %115 : vector<8x1xf32> to vector<8x8xf32>
    %117 = arith.mulf %112, %116 : vector<8x8xf32>
    %cst_50 = arith.constant dense<0.000000e+00> : vector<8x8xf32>
    %118 = tpu.matmul %117, %104, %cst_50 {dimension_numbers = #tpu.dot_dimension_numbers<[1], [0], [0], [1], [0, 0, 1, 1], [], []>} : vector<8x8xf32>, vector<8x8xf32>, vector<8x8xf32> -> vector<8x8xf32>
    %119 = vector.extract_strided_slice %33 {offsets = [0, 40], sizes = [8, 8], strides = [1, 1]} : vector<8x192xf32> to vector<8x8xf32>
    %120 = vector.extract_strided_slice %33 {offsets = [0, 104], sizes = [8, 8], strides = [1, 1]} : vector<8x192xf32> to vector<8x8xf32>
    %121 = vector.extract_strided_slice %33 {offsets = [0, 168], sizes = [8, 8], strides = [1, 1]} : vector<8x192xf32> to vector<8x8xf32>
    %cst_51 = arith.constant dense<0.000000e+00> : vector<8x8xf32>
    %122 = tpu.matmul %119, %120, %cst_51 {dimension_numbers = #tpu.dot_dimension_numbers<[1], [1], [0], [0], [0, 0, 1, 0], [], []>} : vector<8x8xf32>, vector<8x8xf32>, vector<8x8xf32> -> vector<8x8xf32>
    %123 = vector.broadcast %10 : vector<1x8xf32> to vector<8x8xf32>
    %124 = arith.addf %122, %123 : vector<8x8xf32>
    %cst_52 = arith.constant dense<0xFF800000> : vector<8xf32>
    %125 = vector.multi_reduction <maximumf>, %124, %cst_52 [1] : vector<8x8xf32> to vector<8xf32>
    %126 = vector.shape_cast %125 : vector<8xf32> to vector<8x1xf32>
    %127 = vector.broadcast %126 : vector<8x1xf32> to vector<8x8xf32>
    %128 = arith.subf %124, %127 : vector<8x8xf32>
    %129 = math.exp %128 : vector<8x8xf32>
    %cst_53 = arith.constant dense<0.000000e+00> : vector<8xf32>
    %130 = vector.multi_reduction <add>, %129, %cst_53 [1] : vector<8x8xf32> to vector<8xf32>
    %131 = vector.shape_cast %130 : vector<8xf32> to vector<8x1xf32>
    %132 = tpu.reciprocal %131 {approx = true} : vector<8x1xf32> -> vector<8x1xf32>
    %133 = vector.broadcast %132 : vector<8x1xf32> to vector<8x8xf32>
    %134 = arith.mulf %129, %133 : vector<8x8xf32>
    %cst_54 = arith.constant dense<0.000000e+00> : vector<8x8xf32>
    %135 = tpu.matmul %134, %121, %cst_54 {dimension_numbers = #tpu.dot_dimension_numbers<[1], [0], [0], [1], [0, 0, 1, 1], [], []>} : vector<8x8xf32>, vector<8x8xf32>, vector<8x8xf32> -> vector<8x8xf32>
    %136 = vector.extract_strided_slice %33 {offsets = [0, 48], sizes = [8, 8], strides = [1, 1]} : vector<8x192xf32> to vector<8x8xf32>
    %137 = vector.extract_strided_slice %33 {offsets = [0, 112], sizes = [8, 8], strides = [1, 1]} : vector<8x192xf32> to vector<8x8xf32>
    %138 = vector.extract_strided_slice %33 {offsets = [0, 176], sizes = [8, 8], strides = [1, 1]} : vector<8x192xf32> to vector<8x8xf32>
    %cst_55 = arith.constant dense<0.000000e+00> : vector<8x8xf32>
    %139 = tpu.matmul %136, %137, %cst_55 {dimension_numbers = #tpu.dot_dimension_numbers<[1], [1], [0], [0], [0, 0, 1, 0], [], []>} : vector<8x8xf32>, vector<8x8xf32>, vector<8x8xf32> -> vector<8x8xf32>
    %140 = vector.broadcast %10 : vector<1x8xf32> to vector<8x8xf32>
    %141 = arith.addf %139, %140 : vector<8x8xf32>
    %cst_56 = arith.constant dense<0xFF800000> : vector<8xf32>
    %142 = vector.multi_reduction <maximumf>, %141, %cst_56 [1] : vector<8x8xf32> to vector<8xf32>
    %143 = vector.shape_cast %142 : vector<8xf32> to vector<8x1xf32>
    %144 = vector.broadcast %143 : vector<8x1xf32> to vector<8x8xf32>
    %145 = arith.subf %141, %144 : vector<8x8xf32>
    %146 = math.exp %145 : vector<8x8xf32>
    %cst_57 = arith.constant dense<0.000000e+00> : vector<8xf32>
    %147 = vector.multi_reduction <add>, %146, %cst_57 [1] : vector<8x8xf32> to vector<8xf32>
    %148 = vector.shape_cast %147 : vector<8xf32> to vector<8x1xf32>
    %149 = tpu.reciprocal %148 {approx = true} : vector<8x1xf32> -> vector<8x1xf32>
    %150 = vector.broadcast %149 : vector<8x1xf32> to vector<8x8xf32>
    %151 = arith.mulf %146, %150 : vector<8x8xf32>
    %cst_58 = arith.constant dense<0.000000e+00> : vector<8x8xf32>
    %152 = tpu.matmul %151, %138, %cst_58 {dimension_numbers = #tpu.dot_dimension_numbers<[1], [0], [0], [1], [0, 0, 1, 1], [], []>} : vector<8x8xf32>, vector<8x8xf32>, vector<8x8xf32> -> vector<8x8xf32>
    %153 = vector.extract_strided_slice %33 {offsets = [0, 56], sizes = [8, 8], strides = [1, 1]} : vector<8x192xf32> to vector<8x8xf32>
    %154 = vector.extract_strided_slice %33 {offsets = [0, 120], sizes = [8, 8], strides = [1, 1]} : vector<8x192xf32> to vector<8x8xf32>
    %155 = vector.extract_strided_slice %33 {offsets = [0, 184], sizes = [8, 8], strides = [1, 1]} : vector<8x192xf32> to vector<8x8xf32>
    %cst_59 = arith.constant dense<0.000000e+00> : vector<8x8xf32>
    %156 = tpu.matmul %153, %154, %cst_59 {dimension_numbers = #tpu.dot_dimension_numbers<[1], [1], [0], [0], [0, 0, 1, 0], [], []>} : vector<8x8xf32>, vector<8x8xf32>, vector<8x8xf32> -> vector<8x8xf32>
    %157 = vector.broadcast %10 : vector<1x8xf32> to vector<8x8xf32>
    %158 = arith.addf %156, %157 : vector<8x8xf32>
    %cst_60 = arith.constant dense<0xFF800000> : vector<8xf32>
    %159 = vector.multi_reduction <maximumf>, %158, %cst_60 [1] : vector<8x8xf32> to vector<8xf32>
    %160 = vector.shape_cast %159 : vector<8xf32> to vector<8x1xf32>
    %161 = vector.broadcast %160 : vector<8x1xf32> to vector<8x8xf32>
    %162 = arith.subf %158, %161 : vector<8x8xf32>
    %163 = math.exp %162 : vector<8x8xf32>
    %cst_61 = arith.constant dense<0.000000e+00> : vector<8xf32>
    %164 = vector.multi_reduction <add>, %163, %cst_61 [1] : vector<8x8xf32> to vector<8xf32>
    %165 = vector.shape_cast %164 : vector<8xf32> to vector<8x1xf32>
    %166 = tpu.reciprocal %165 {approx = true} : vector<8x1xf32> -> vector<8x1xf32>
    %167 = vector.broadcast %166 : vector<8x1xf32> to vector<8x8xf32>
    %168 = arith.mulf %163, %167 : vector<8x8xf32>
    %cst_62 = arith.constant dense<0.000000e+00> : vector<8x8xf32>
    %169 = tpu.matmul %168, %155, %cst_62 {dimension_numbers = #tpu.dot_dimension_numbers<[1], [0], [0], [1], [0, 0, 1, 1], [], []>} : vector<8x8xf32>, vector<8x8xf32>, vector<8x8xf32> -> vector<8x8xf32>
    %170 = tpu.concatenate %50, %67, %84, %101, %118, %135, %152, %169 in 1 : vector<8x8xf32>, vector<8x8xf32>, vector<8x8xf32>, vector<8x8xf32>, vector<8x8xf32>, vector<8x8xf32>, vector<8x8xf32>, vector<8x8xf32> -> vector<8x64xf32>
    %cst_63 = arith.constant dense<0.000000e+00> : vector<8x64xf32>
    %171 = tpu.matmul %170, %16, %cst_63 {dimension_numbers = #tpu.dot_dimension_numbers<[1], [0], [0], [1], [0, 0, 1, 1], [], []>} : vector<8x64xf32>, vector<64x64xf32>, vector<8x64xf32> -> vector<8x64xf32>
    %172 = vector.broadcast %25 : vector<1x64xf32> to vector<8x64xf32>
    %173 = arith.addf %171, %172 : vector<8x64xf32>
    %174 = arith.addf %3, %173 : vector<8x64xf32>
    %cst_64 = arith.constant dense<0.000000e+00> : vector<8xf32>
    %175 = vector.multi_reduction <add>, %174, %cst_64 [1] : vector<8x64xf32> to vector<8xf32>
    %176 = vector.shape_cast %175 : vector<8xf32> to vector<8x1xf32>
    %cst_65 = arith.constant 6.400000e+01 : f32
    %177 = vector.broadcast %cst_65 : f32 to vector<8x1xf32>
    %178 = arith.divf %176, %177 : vector<8x1xf32>
    %179 = vector.broadcast %178 : vector<8x1xf32> to vector<8x64xf32>
    %180 = arith.subf %174, %179 : vector<8x64xf32>
    %181 = arith.mulf %180, %180 : vector<8x64xf32>
    %cst_66 = arith.constant dense<0.000000e+00> : vector<8xf32>
    %182 = vector.multi_reduction <add>, %181, %cst_66 [1] : vector<8x64xf32> to vector<8xf32>
    %183 = vector.shape_cast %182 : vector<8xf32> to vector<8x1xf32>
    %cst_67 = arith.constant 6.400000e+01 : f32
    %184 = vector.broadcast %cst_67 : f32 to vector<8x1xf32>
    %185 = arith.divf %183, %184 : vector<8x1xf32>
    %186 = vector.broadcast %178 : vector<8x1xf32> to vector<8x64xf32>
    %187 = arith.subf %174, %186 : vector<8x64xf32>
    %cst_68 = arith.constant 9.99999974E-6 : f32
    %188 = vector.broadcast %cst_68 : f32 to vector<8x1xf32>
    %189 = arith.addf %185, %188 : vector<8x1xf32>
    %190 = math.rsqrt %189 : vector<8x1xf32>
    %191 = vector.broadcast %190 : vector<8x1xf32> to vector<8x64xf32>
    %192 = arith.mulf %187, %191 : vector<8x64xf32>
    %193 = vector.broadcast %27 : vector<1x64xf32> to vector<8x64xf32>
    %194 = arith.mulf %192, %193 : vector<8x64xf32>
    %195 = vector.broadcast %28 : vector<1x64xf32> to vector<8x64xf32>
    %196 = arith.addf %194, %195 : vector<8x64xf32>
    %cst_69 = arith.constant dense<0.000000e+00> : vector<8x256xf32>
    %197 = tpu.matmul %196, %18, %cst_69 {dimension_numbers = #tpu.dot_dimension_numbers<[1], [0], [0], [1], [0, 0, 1, 1], [], []>} : vector<8x64xf32>, vector<64x256xf32>, vector<8x256xf32> -> vector<8x256xf32>
    %198 = vector.broadcast %20 : vector<1x256xf32> to vector<8x256xf32>
    %199 = arith.addf %197, %198 : vector<8x256xf32>
    %cst_70 = arith.constant 0.000000e+00 : f32
    %200 = vector.broadcast %cst_70 : f32 to vector<8x256xf32>
    %201 = arith.maximumf %199, %200 : vector<8x256xf32>
    %cst_71 = arith.constant dense<0.000000e+00> : vector<8x64xf32>
    %202 = tpu.matmul %201, %22, %cst_71 {dimension_numbers = #tpu.dot_dimension_numbers<[1], [0], [0], [1], [0, 0, 1, 1], [], []>} : vector<8x256xf32>, vector<256x64xf32>, vector<8x64xf32> -> vector<8x64xf32>
    %203 = vector.broadcast %26 : vector<1x64xf32> to vector<8x64xf32>
    %204 = arith.addf %202, %203 : vector<8x64xf32>
    %205 = arith.addf %196, %204 : vector<8x64xf32>
    %cst_72 = arith.constant dense<0.000000e+00> : vector<8xf32>
    %206 = vector.multi_reduction <add>, %205, %cst_72 [1] : vector<8x64xf32> to vector<8xf32>
    %207 = vector.shape_cast %206 : vector<8xf32> to vector<8x1xf32>
    %cst_73 = arith.constant 6.400000e+01 : f32
    %208 = vector.broadcast %cst_73 : f32 to vector<8x1xf32>
    %209 = arith.divf %207, %208 : vector<8x1xf32>
    %210 = vector.broadcast %209 : vector<8x1xf32> to vector<8x64xf32>
    %211 = arith.subf %205, %210 : vector<8x64xf32>
    %212 = arith.mulf %211, %211 : vector<8x64xf32>
    %cst_74 = arith.constant dense<0.000000e+00> : vector<8xf32>
    %213 = vector.multi_reduction <add>, %212, %cst_74 [1] : vector<8x64xf32> to vector<8xf32>
    %214 = vector.shape_cast %213 : vector<8xf32> to vector<8x1xf32>
    %cst_75 = arith.constant 6.400000e+01 : f32
    %215 = vector.broadcast %cst_75 : f32 to vector<8x1xf32>
    %216 = arith.divf %214, %215 : vector<8x1xf32>
    %217 = vector.broadcast %209 : vector<8x1xf32> to vector<8x64xf32>
    %218 = arith.subf %205, %217 : vector<8x64xf32>
    %cst_76 = arith.constant 9.99999974E-6 : f32
    %219 = vector.broadcast %cst_76 : f32 to vector<8x1xf32>
    %220 = arith.addf %216, %219 : vector<8x1xf32>
    %221 = math.rsqrt %220 : vector<8x1xf32>
    %222 = vector.broadcast %221 : vector<8x1xf32> to vector<8x64xf32>
    %223 = arith.mulf %218, %222 : vector<8x64xf32>
    %224 = vector.broadcast %29 : vector<1x64xf32> to vector<8x64xf32>
    %225 = arith.mulf %223, %224 : vector<8x64xf32>
    %226 = vector.broadcast %30 : vector<1x64xf32> to vector<8x64xf32>
    %227 = arith.addf %225, %226 : vector<8x64xf32>
    %c1 = arith.constant 1 : index
    %c0_77 = arith.constant 0 : index
    %c0_78 = arith.constant 0 : index
    %228 = vector.load %arg4[%c1, %c0_77, %c0_78] : memref<2x64x192xf32, #tpu.memory_space<vmem>>, vector<1x64x192xf32>
    %229 = vector.shape_cast %228 : vector<1x64x192xf32> to vector<64x192xf32>
    %c1_79 = arith.constant 1 : index
    %c0_80 = arith.constant 0 : index
    %c0_81 = arith.constant 0 : index
    %230 = vector.load %arg5[%c1_79, %c0_80, %c0_81] : memref<2x1x192xf32, #tpu.memory_space<vmem>>, vector<1x1x192xf32>
    %231 = vector.shape_cast %230 : vector<1x1x192xf32> to vector<1x192xf32>
    %c1_82 = arith.constant 1 : index
    %c0_83 = arith.constant 0 : index
    %c0_84 = arith.constant 0 : index
    %232 = vector.load %arg6[%c1_82, %c0_83, %c0_84] : memref<2x64x64xf32, #tpu.memory_space<vmem>>, vector<1x64x64xf32>
    %233 = vector.shape_cast %232 : vector<1x64x64xf32> to vector<64x64xf32>
    %c1_85 = arith.constant 1 : index
    %c0_86 = arith.constant 0 : index
    %c0_87 = arith.constant 0 : index
    %234 = vector.load %arg7[%c1_85, %c0_86, %c0_87] : memref<2x64x256xf32, #tpu.memory_space<vmem>>, vector<1x64x256xf32>
    %235 = vector.shape_cast %234 : vector<1x64x256xf32> to vector<64x256xf32>
    %c1_88 = arith.constant 1 : index
    %c0_89 = arith.constant 0 : index
    %c0_90 = arith.constant 0 : index
    %236 = vector.load %arg8[%c1_88, %c0_89, %c0_90] : memref<2x1x256xf32, #tpu.memory_space<vmem>>, vector<1x1x256xf32>
    %237 = vector.shape_cast %236 : vector<1x1x256xf32> to vector<1x256xf32>
    %c1_91 = arith.constant 1 : index
    %c0_92 = arith.constant 0 : index
    %c0_93 = arith.constant 0 : index
    %238 = vector.load %arg9[%c1_91, %c0_92, %c0_93] : memref<2x256x64xf32, #tpu.memory_space<vmem>>, vector<1x256x64xf32>
    %239 = vector.shape_cast %238 : vector<1x256x64xf32> to vector<256x64xf32>
    %c1_94 = arith.constant 1 : index
    %c0_95 = arith.constant 0 : index
    %c0_96 = arith.constant 0 : index
    %240 = vector.load %arg10[%c1_94, %c0_95, %c0_96] : memref<2x6x64xf32, #tpu.memory_space<vmem>>, vector<1x6x64xf32>
    %241 = vector.shape_cast %240 : vector<1x6x64xf32> to vector<6x64xf32>
    %242 = vector.extract_strided_slice %241 {offsets = [0, 0], sizes = [1, 64], strides = [1, 1]} : vector<6x64xf32> to vector<1x64xf32>
    %243 = vector.extract_strided_slice %241 {offsets = [1, 0], sizes = [1, 64], strides = [1, 1]} : vector<6x64xf32> to vector<1x64xf32>
    %244 = vector.extract_strided_slice %241 {offsets = [2, 0], sizes = [1, 64], strides = [1, 1]} : vector<6x64xf32> to vector<1x64xf32>
    %245 = vector.extract_strided_slice %241 {offsets = [3, 0], sizes = [1, 64], strides = [1, 1]} : vector<6x64xf32> to vector<1x64xf32>
    %246 = vector.extract_strided_slice %241 {offsets = [4, 0], sizes = [1, 64], strides = [1, 1]} : vector<6x64xf32> to vector<1x64xf32>
    %247 = vector.extract_strided_slice %241 {offsets = [5, 0], sizes = [1, 64], strides = [1, 1]} : vector<6x64xf32> to vector<1x64xf32>
    %cst_97 = arith.constant dense<0.000000e+00> : vector<8x192xf32>
    %248 = tpu.matmul %227, %229, %cst_97 {dimension_numbers = #tpu.dot_dimension_numbers<[1], [0], [0], [1], [0, 0, 1, 1], [], []>} : vector<8x64xf32>, vector<64x192xf32>, vector<8x192xf32> -> vector<8x192xf32>
    %249 = vector.broadcast %231 : vector<1x192xf32> to vector<8x192xf32>
    %250 = arith.addf %248, %249 : vector<8x192xf32>
    %251 = vector.extract_strided_slice %250 {offsets = [0, 0], sizes = [8, 8], strides = [1, 1]} : vector<8x192xf32> to vector<8x8xf32>
    %252 = vector.extract_strided_slice %250 {offsets = [0, 64], sizes = [8, 8], strides = [1, 1]} : vector<8x192xf32> to vector<8x8xf32>
    %253 = vector.extract_strided_slice %250 {offsets = [0, 128], sizes = [8, 8], strides = [1, 1]} : vector<8x192xf32> to vector<8x8xf32>
    %cst_98 = arith.constant dense<0.000000e+00> : vector<8x8xf32>
    %254 = tpu.matmul %251, %252, %cst_98 {dimension_numbers = #tpu.dot_dimension_numbers<[1], [1], [0], [0], [0, 0, 1, 0], [], []>} : vector<8x8xf32>, vector<8x8xf32>, vector<8x8xf32> -> vector<8x8xf32>
    %255 = vector.broadcast %10 : vector<1x8xf32> to vector<8x8xf32>
    %256 = arith.addf %254, %255 : vector<8x8xf32>
    %cst_99 = arith.constant dense<0xFF800000> : vector<8xf32>
    %257 = vector.multi_reduction <maximumf>, %256, %cst_99 [1] : vector<8x8xf32> to vector<8xf32>
    %258 = vector.shape_cast %257 : vector<8xf32> to vector<8x1xf32>
    %259 = vector.broadcast %258 : vector<8x1xf32> to vector<8x8xf32>
    %260 = arith.subf %256, %259 : vector<8x8xf32>
    %261 = math.exp %260 : vector<8x8xf32>
    %cst_100 = arith.constant dense<0.000000e+00> : vector<8xf32>
    %262 = vector.multi_reduction <add>, %261, %cst_100 [1] : vector<8x8xf32> to vector<8xf32>
    %263 = vector.shape_cast %262 : vector<8xf32> to vector<8x1xf32>
    %264 = tpu.reciprocal %263 {approx = true} : vector<8x1xf32> -> vector<8x1xf32>
    %265 = vector.broadcast %264 : vector<8x1xf32> to vector<8x8xf32>
    %266 = arith.mulf %261, %265 : vector<8x8xf32>
    %cst_101 = arith.constant dense<0.000000e+00> : vector<8x8xf32>
    %267 = tpu.matmul %266, %253, %cst_101 {dimension_numbers = #tpu.dot_dimension_numbers<[1], [0], [0], [1], [0, 0, 1, 1], [], []>} : vector<8x8xf32>, vector<8x8xf32>, vector<8x8xf32> -> vector<8x8xf32>
    %268 = vector.extract_strided_slice %250 {offsets = [0, 8], sizes = [8, 8], strides = [1, 1]} : vector<8x192xf32> to vector<8x8xf32>
    %269 = vector.extract_strided_slice %250 {offsets = [0, 72], sizes = [8, 8], strides = [1, 1]} : vector<8x192xf32> to vector<8x8xf32>
    %270 = vector.extract_strided_slice %250 {offsets = [0, 136], sizes = [8, 8], strides = [1, 1]} : vector<8x192xf32> to vector<8x8xf32>
    %cst_102 = arith.constant dense<0.000000e+00> : vector<8x8xf32>
    %271 = tpu.matmul %268, %269, %cst_102 {dimension_numbers = #tpu.dot_dimension_numbers<[1], [1], [0], [0], [0, 0, 1, 0], [], []>} : vector<8x8xf32>, vector<8x8xf32>, vector<8x8xf32> -> vector<8x8xf32>
    %272 = vector.broadcast %10 : vector<1x8xf32> to vector<8x8xf32>
    %273 = arith.addf %271, %272 : vector<8x8xf32>
    %cst_103 = arith.constant dense<0xFF800000> : vector<8xf32>
    %274 = vector.multi_reduction <maximumf>, %273, %cst_103 [1] : vector<8x8xf32> to vector<8xf32>
    %275 = vector.shape_cast %274 : vector<8xf32> to vector<8x1xf32>
    %276 = vector.broadcast %275 : vector<8x1xf32> to vector<8x8xf32>
    %277 = arith.subf %273, %276 : vector<8x8xf32>
    %278 = math.exp %277 : vector<8x8xf32>
    %cst_104 = arith.constant dense<0.000000e+00> : vector<8xf32>
    %279 = vector.multi_reduction <add>, %278, %cst_104 [1] : vector<8x8xf32> to vector<8xf32>
    %280 = vector.shape_cast %279 : vector<8xf32> to vector<8x1xf32>
    %281 = tpu.reciprocal %280 {approx = true} : vector<8x1xf32> -> vector<8x1xf32>
    %282 = vector.broadcast %281 : vector<8x1xf32> to vector<8x8xf32>
    %283 = arith.mulf %278, %282 : vector<8x8xf32>
    %cst_105 = arith.constant dense<0.000000e+00> : vector<8x8xf32>
    %284 = tpu.matmul %283, %270, %cst_105 {dimension_numbers = #tpu.dot_dimension_numbers<[1], [0], [0], [1], [0, 0, 1, 1], [], []>} : vector<8x8xf32>, vector<8x8xf32>, vector<8x8xf32> -> vector<8x8xf32>
    %285 = vector.extract_strided_slice %250 {offsets = [0, 16], sizes = [8, 8], strides = [1, 1]} : vector<8x192xf32> to vector<8x8xf32>
    %286 = vector.extract_strided_slice %250 {offsets = [0, 80], sizes = [8, 8], strides = [1, 1]} : vector<8x192xf32> to vector<8x8xf32>
    %287 = vector.extract_strided_slice %250 {offsets = [0, 144], sizes = [8, 8], strides = [1, 1]} : vector<8x192xf32> to vector<8x8xf32>
    %cst_106 = arith.constant dense<0.000000e+00> : vector<8x8xf32>
    %288 = tpu.matmul %285, %286, %cst_106 {dimension_numbers = #tpu.dot_dimension_numbers<[1], [1], [0], [0], [0, 0, 1, 0], [], []>} : vector<8x8xf32>, vector<8x8xf32>, vector<8x8xf32> -> vector<8x8xf32>
    %289 = vector.broadcast %10 : vector<1x8xf32> to vector<8x8xf32>
    %290 = arith.addf %288, %289 : vector<8x8xf32>
    %cst_107 = arith.constant dense<0xFF800000> : vector<8xf32>
    %291 = vector.multi_reduction <maximumf>, %290, %cst_107 [1] : vector<8x8xf32> to vector<8xf32>
    %292 = vector.shape_cast %291 : vector<8xf32> to vector<8x1xf32>
    %293 = vector.broadcast %292 : vector<8x1xf32> to vector<8x8xf32>
    %294 = arith.subf %290, %293 : vector<8x8xf32>
    %295 = math.exp %294 : vector<8x8xf32>
    %cst_108 = arith.constant dense<0.000000e+00> : vector<8xf32>
    %296 = vector.multi_reduction <add>, %295, %cst_108 [1] : vector<8x8xf32> to vector<8xf32>
    %297 = vector.shape_cast %296 : vector<8xf32> to vector<8x1xf32>
    %298 = tpu.reciprocal %297 {approx = true} : vector<8x1xf32> -> vector<8x1xf32>
    %299 = vector.broadcast %298 : vector<8x1xf32> to vector<8x8xf32>
    %300 = arith.mulf %295, %299 : vector<8x8xf32>
    %cst_109 = arith.constant dense<0.000000e+00> : vector<8x8xf32>
    %301 = tpu.matmul %300, %287, %cst_109 {dimension_numbers = #tpu.dot_dimension_numbers<[1], [0], [0], [1], [0, 0, 1, 1], [], []>} : vector<8x8xf32>, vector<8x8xf32>, vector<8x8xf32> -> vector<8x8xf32>
    %302 = vector.extract_strided_slice %250 {offsets = [0, 24], sizes = [8, 8], strides = [1, 1]} : vector<8x192xf32> to vector<8x8xf32>
    %303 = vector.extract_strided_slice %250 {offsets = [0, 88], sizes = [8, 8], strides = [1, 1]} : vector<8x192xf32> to vector<8x8xf32>
    %304 = vector.extract_strided_slice %250 {offsets = [0, 152], sizes = [8, 8], strides = [1, 1]} : vector<8x192xf32> to vector<8x8xf32>
    %cst_110 = arith.constant dense<0.000000e+00> : vector<8x8xf32>
    %305 = tpu.matmul %302, %303, %cst_110 {dimension_numbers = #tpu.dot_dimension_numbers<[1], [1], [0], [0], [0, 0, 1, 0], [], []>} : vector<8x8xf32>, vector<8x8xf32>, vector<8x8xf32> -> vector<8x8xf32>
    %306 = vector.broadcast %10 : vector<1x8xf32> to vector<8x8xf32>
    %307 = arith.addf %305, %306 : vector<8x8xf32>
    %cst_111 = arith.constant dense<0xFF800000> : vector<8xf32>
    %308 = vector.multi_reduction <maximumf>, %307, %cst_111 [1] : vector<8x8xf32> to vector<8xf32>
    %309 = vector.shape_cast %308 : vector<8xf32> to vector<8x1xf32>
    %310 = vector.broadcast %309 : vector<8x1xf32> to vector<8x8xf32>
    %311 = arith.subf %307, %310 : vector<8x8xf32>
    %312 = math.exp %311 : vector<8x8xf32>
    %cst_112 = arith.constant dense<0.000000e+00> : vector<8xf32>
    %313 = vector.multi_reduction <add>, %312, %cst_112 [1] : vector<8x8xf32> to vector<8xf32>
    %314 = vector.shape_cast %313 : vector<8xf32> to vector<8x1xf32>
    %315 = tpu.reciprocal %314 {approx = true} : vector<8x1xf32> -> vector<8x1xf32>
    %316 = vector.broadcast %315 : vector<8x1xf32> to vector<8x8xf32>
    %317 = arith.mulf %312, %316 : vector<8x8xf32>
    %cst_113 = arith.constant dense<0.000000e+00> : vector<8x8xf32>
    %318 = tpu.matmul %317, %304, %cst_113 {dimension_numbers = #tpu.dot_dimension_numbers<[1], [0], [0], [1], [0, 0, 1, 1], [], []>} : vector<8x8xf32>, vector<8x8xf32>, vector<8x8xf32> -> vector<8x8xf32>
    %319 = vector.extract_strided_slice %250 {offsets = [0, 32], sizes = [8, 8], strides = [1, 1]} : vector<8x192xf32> to vector<8x8xf32>
    %320 = vector.extract_strided_slice %250 {offsets = [0, 96], sizes = [8, 8], strides = [1, 1]} : vector<8x192xf32> to vector<8x8xf32>
    %321 = vector.extract_strided_slice %250 {offsets = [0, 160], sizes = [8, 8], strides = [1, 1]} : vector<8x192xf32> to vector<8x8xf32>
    %cst_114 = arith.constant dense<0.000000e+00> : vector<8x8xf32>
    %322 = tpu.matmul %319, %320, %cst_114 {dimension_numbers = #tpu.dot_dimension_numbers<[1], [1], [0], [0], [0, 0, 1, 0], [], []>} : vector<8x8xf32>, vector<8x8xf32>, vector<8x8xf32> -> vector<8x8xf32>
    %323 = vector.broadcast %10 : vector<1x8xf32> to vector<8x8xf32>
    %324 = arith.addf %322, %323 : vector<8x8xf32>
    %cst_115 = arith.constant dense<0xFF800000> : vector<8xf32>
    %325 = vector.multi_reduction <maximumf>, %324, %cst_115 [1] : vector<8x8xf32> to vector<8xf32>
    %326 = vector.shape_cast %325 : vector<8xf32> to vector<8x1xf32>
    %327 = vector.broadcast %326 : vector<8x1xf32> to vector<8x8xf32>
    %328 = arith.subf %324, %327 : vector<8x8xf32>
    %329 = math.exp %328 : vector<8x8xf32>
    %cst_116 = arith.constant dense<0.000000e+00> : vector<8xf32>
    %330 = vector.multi_reduction <add>, %329, %cst_116 [1] : vector<8x8xf32> to vector<8xf32>
    %331 = vector.shape_cast %330 : vector<8xf32> to vector<8x1xf32>
    %332 = tpu.reciprocal %331 {approx = true} : vector<8x1xf32> -> vector<8x1xf32>
    %333 = vector.broadcast %332 : vector<8x1xf32> to vector<8x8xf32>
    %334 = arith.mulf %329, %333 : vector<8x8xf32>
    %cst_117 = arith.constant dense<0.000000e+00> : vector<8x8xf32>
    %335 = tpu.matmul %334, %321, %cst_117 {dimension_numbers = #tpu.dot_dimension_numbers<[1], [0], [0], [1], [0, 0, 1, 1], [], []>} : vector<8x8xf32>, vector<8x8xf32>, vector<8x8xf32> -> vector<8x8xf32>
    %336 = vector.extract_strided_slice %250 {offsets = [0, 40], sizes = [8, 8], strides = [1, 1]} : vector<8x192xf32> to vector<8x8xf32>
    %337 = vector.extract_strided_slice %250 {offsets = [0, 104], sizes = [8, 8], strides = [1, 1]} : vector<8x192xf32> to vector<8x8xf32>
    %338 = vector.extract_strided_slice %250 {offsets = [0, 168], sizes = [8, 8], strides = [1, 1]} : vector<8x192xf32> to vector<8x8xf32>
    %cst_118 = arith.constant dense<0.000000e+00> : vector<8x8xf32>
    %339 = tpu.matmul %336, %337, %cst_118 {dimension_numbers = #tpu.dot_dimension_numbers<[1], [1], [0], [0], [0, 0, 1, 0], [], []>} : vector<8x8xf32>, vector<8x8xf32>, vector<8x8xf32> -> vector<8x8xf32>
    %340 = vector.broadcast %10 : vector<1x8xf32> to vector<8x8xf32>
    %341 = arith.addf %339, %340 : vector<8x8xf32>
    %cst_119 = arith.constant dense<0xFF800000> : vector<8xf32>
    %342 = vector.multi_reduction <maximumf>, %341, %cst_119 [1] : vector<8x8xf32> to vector<8xf32>
    %343 = vector.shape_cast %342 : vector<8xf32> to vector<8x1xf32>
    %344 = vector.broadcast %343 : vector<8x1xf32> to vector<8x8xf32>
    %345 = arith.subf %341, %344 : vector<8x8xf32>
    %346 = math.exp %345 : vector<8x8xf32>
    %cst_120 = arith.constant dense<0.000000e+00> : vector<8xf32>
    %347 = vector.multi_reduction <add>, %346, %cst_120 [1] : vector<8x8xf32> to vector<8xf32>
    %348 = vector.shape_cast %347 : vector<8xf32> to vector<8x1xf32>
    %349 = tpu.reciprocal %348 {approx = true} : vector<8x1xf32> -> vector<8x1xf32>
    %350 = vector.broadcast %349 : vector<8x1xf32> to vector<8x8xf32>
    %351 = arith.mulf %346, %350 : vector<8x8xf32>
    %cst_121 = arith.constant dense<0.000000e+00> : vector<8x8xf32>
    %352 = tpu.matmul %351, %338, %cst_121 {dimension_numbers = #tpu.dot_dimension_numbers<[1], [0], [0], [1], [0, 0, 1, 1], [], []>} : vector<8x8xf32>, vector<8x8xf32>, vector<8x8xf32> -> vector<8x8xf32>
    %353 = vector.extract_strided_slice %250 {offsets = [0, 48], sizes = [8, 8], strides = [1, 1]} : vector<8x192xf32> to vector<8x8xf32>
    %354 = vector.extract_strided_slice %250 {offsets = [0, 112], sizes = [8, 8], strides = [1, 1]} : vector<8x192xf32> to vector<8x8xf32>
    %355 = vector.extract_strided_slice %250 {offsets = [0, 176], sizes = [8, 8], strides = [1, 1]} : vector<8x192xf32> to vector<8x8xf32>
    %cst_122 = arith.constant dense<0.000000e+00> : vector<8x8xf32>
    %356 = tpu.matmul %353, %354, %cst_122 {dimension_numbers = #tpu.dot_dimension_numbers<[1], [1], [0], [0], [0, 0, 1, 0], [], []>} : vector<8x8xf32>, vector<8x8xf32>, vector<8x8xf32> -> vector<8x8xf32>
    %357 = vector.broadcast %10 : vector<1x8xf32> to vector<8x8xf32>
    %358 = arith.addf %356, %357 : vector<8x8xf32>
    %cst_123 = arith.constant dense<0xFF800000> : vector<8xf32>
    %359 = vector.multi_reduction <maximumf>, %358, %cst_123 [1] : vector<8x8xf32> to vector<8xf32>
    %360 = vector.shape_cast %359 : vector<8xf32> to vector<8x1xf32>
    %361 = vector.broadcast %360 : vector<8x1xf32> to vector<8x8xf32>
    %362 = arith.subf %358, %361 : vector<8x8xf32>
    %363 = math.exp %362 : vector<8x8xf32>
    %cst_124 = arith.constant dense<0.000000e+00> : vector<8xf32>
    %364 = vector.multi_reduction <add>, %363, %cst_124 [1] : vector<8x8xf32> to vector<8xf32>
    %365 = vector.shape_cast %364 : vector<8xf32> to vector<8x1xf32>
    %366 = tpu.reciprocal %365 {approx = true} : vector<8x1xf32> -> vector<8x1xf32>
    %367 = vector.broadcast %366 : vector<8x1xf32> to vector<8x8xf32>
    %368 = arith.mulf %363, %367 : vector<8x8xf32>
    %cst_125 = arith.constant dense<0.000000e+00> : vector<8x8xf32>
    %369 = tpu.matmul %368, %355, %cst_125 {dimension_numbers = #tpu.dot_dimension_numbers<[1], [0], [0], [1], [0, 0, 1, 1], [], []>} : vector<8x8xf32>, vector<8x8xf32>, vector<8x8xf32> -> vector<8x8xf32>
    %370 = vector.extract_strided_slice %250 {offsets = [0, 56], sizes = [8, 8], strides = [1, 1]} : vector<8x192xf32> to vector<8x8xf32>
    %371 = vector.extract_strided_slice %250 {offsets = [0, 120], sizes = [8, 8], strides = [1, 1]} : vector<8x192xf32> to vector<8x8xf32>
    %372 = vector.extract_strided_slice %250 {offsets = [0, 184], sizes = [8, 8], strides = [1, 1]} : vector<8x192xf32> to vector<8x8xf32>
    %cst_126 = arith.constant dense<0.000000e+00> : vector<8x8xf32>
    %373 = tpu.matmul %370, %371, %cst_126 {dimension_numbers = #tpu.dot_dimension_numbers<[1], [1], [0], [0], [0, 0, 1, 0], [], []>} : vector<8x8xf32>, vector<8x8xf32>, vector<8x8xf32> -> vector<8x8xf32>
    %374 = vector.broadcast %10 : vector<1x8xf32> to vector<8x8xf32>
    %375 = arith.addf %373, %374 : vector<8x8xf32>
    %cst_127 = arith.constant dense<0xFF800000> : vector<8xf32>
    %376 = vector.multi_reduction <maximumf>, %375, %cst_127 [1] : vector<8x8xf32> to vector<8xf32>
    %377 = vector.shape_cast %376 : vector<8xf32> to vector<8x1xf32>
    %378 = vector.broadcast %377 : vector<8x1xf32> to vector<8x8xf32>
    %379 = arith.subf %375, %378 : vector<8x8xf32>
    %380 = math.exp %379 : vector<8x8xf32>
    %cst_128 = arith.constant dense<0.000000e+00> : vector<8xf32>
    %381 = vector.multi_reduction <add>, %380, %cst_128 [1] : vector<8x8xf32> to vector<8xf32>
    %382 = vector.shape_cast %381 : vector<8xf32> to vector<8x1xf32>
    %383 = tpu.reciprocal %382 {approx = true} : vector<8x1xf32> -> vector<8x1xf32>
    %384 = vector.broadcast %383 : vector<8x1xf32> to vector<8x8xf32>
    %385 = arith.mulf %380, %384 : vector<8x8xf32>
    %cst_129 = arith.constant dense<0.000000e+00> : vector<8x8xf32>
    %386 = tpu.matmul %385, %372, %cst_129 {dimension_numbers = #tpu.dot_dimension_numbers<[1], [0], [0], [1], [0, 0, 1, 1], [], []>} : vector<8x8xf32>, vector<8x8xf32>, vector<8x8xf32> -> vector<8x8xf32>
    %387 = tpu.concatenate %267, %284, %301, %318, %335, %352, %369, %386 in 1 : vector<8x8xf32>, vector<8x8xf32>, vector<8x8xf32>, vector<8x8xf32>, vector<8x8xf32>, vector<8x8xf32>, vector<8x8xf32>, vector<8x8xf32> -> vector<8x64xf32>
    %cst_130 = arith.constant dense<0.000000e+00> : vector<8x64xf32>
    %388 = tpu.matmul %387, %233, %cst_130 {dimension_numbers = #tpu.dot_dimension_numbers<[1], [0], [0], [1], [0, 0, 1, 1], [], []>} : vector<8x64xf32>, vector<64x64xf32>, vector<8x64xf32> -> vector<8x64xf32>
    %389 = vector.broadcast %242 : vector<1x64xf32> to vector<8x64xf32>
    %390 = arith.addf %388, %389 : vector<8x64xf32>
    %391 = arith.addf %227, %390 : vector<8x64xf32>
    %cst_131 = arith.constant dense<0.000000e+00> : vector<8xf32>
    %392 = vector.multi_reduction <add>, %391, %cst_131 [1] : vector<8x64xf32> to vector<8xf32>
    %393 = vector.shape_cast %392 : vector<8xf32> to vector<8x1xf32>
    %cst_132 = arith.constant 6.400000e+01 : f32
    %394 = vector.broadcast %cst_132 : f32 to vector<8x1xf32>
    %395 = arith.divf %393, %394 : vector<8x1xf32>
    %396 = vector.broadcast %395 : vector<8x1xf32> to vector<8x64xf32>
    %397 = arith.subf %391, %396 : vector<8x64xf32>
    %398 = arith.mulf %397, %397 : vector<8x64xf32>
    %cst_133 = arith.constant dense<0.000000e+00> : vector<8xf32>
    %399 = vector.multi_reduction <add>, %398, %cst_133 [1] : vector<8x64xf32> to vector<8xf32>
    %400 = vector.shape_cast %399 : vector<8xf32> to vector<8x1xf32>
    %cst_134 = arith.constant 6.400000e+01 : f32
    %401 = vector.broadcast %cst_134 : f32 to vector<8x1xf32>
    %402 = arith.divf %400, %401 : vector<8x1xf32>
    %403 = vector.broadcast %395 : vector<8x1xf32> to vector<8x64xf32>
    %404 = arith.subf %391, %403 : vector<8x64xf32>
    %cst_135 = arith.constant 9.99999974E-6 : f32
    %405 = vector.broadcast %cst_135 : f32 to vector<8x1xf32>
    %406 = arith.addf %402, %405 : vector<8x1xf32>
    %407 = math.rsqrt %406 : vector<8x1xf32>
    %408 = vector.broadcast %407 : vector<8x1xf32> to vector<8x64xf32>
    %409 = arith.mulf %404, %408 : vector<8x64xf32>
    %410 = vector.broadcast %244 : vector<1x64xf32> to vector<8x64xf32>
    %411 = arith.mulf %409, %410 : vector<8x64xf32>
    %412 = vector.broadcast %245 : vector<1x64xf32> to vector<8x64xf32>
    %413 = arith.addf %411, %412 : vector<8x64xf32>
    %cst_136 = arith.constant dense<0.000000e+00> : vector<8x256xf32>
    %414 = tpu.matmul %413, %235, %cst_136 {dimension_numbers = #tpu.dot_dimension_numbers<[1], [0], [0], [1], [0, 0, 1, 1], [], []>} : vector<8x64xf32>, vector<64x256xf32>, vector<8x256xf32> -> vector<8x256xf32>
    %415 = vector.broadcast %237 : vector<1x256xf32> to vector<8x256xf32>
    %416 = arith.addf %414, %415 : vector<8x256xf32>
    %cst_137 = arith.constant 0.000000e+00 : f32
    %417 = vector.broadcast %cst_137 : f32 to vector<8x256xf32>
    %418 = arith.maximumf %416, %417 : vector<8x256xf32>
    %cst_138 = arith.constant dense<0.000000e+00> : vector<8x64xf32>
    %419 = tpu.matmul %418, %239, %cst_138 {dimension_numbers = #tpu.dot_dimension_numbers<[1], [0], [0], [1], [0, 0, 1, 1], [], []>} : vector<8x256xf32>, vector<256x64xf32>, vector<8x64xf32> -> vector<8x64xf32>
    %420 = vector.broadcast %243 : vector<1x64xf32> to vector<8x64xf32>
    %421 = arith.addf %419, %420 : vector<8x64xf32>
    %422 = arith.addf %413, %421 : vector<8x64xf32>
    %cst_139 = arith.constant dense<0.000000e+00> : vector<8xf32>
    %423 = vector.multi_reduction <add>, %422, %cst_139 [1] : vector<8x64xf32> to vector<8xf32>
    %424 = vector.shape_cast %423 : vector<8xf32> to vector<8x1xf32>
    %cst_140 = arith.constant 6.400000e+01 : f32
    %425 = vector.broadcast %cst_140 : f32 to vector<8x1xf32>
    %426 = arith.divf %424, %425 : vector<8x1xf32>
    %427 = vector.broadcast %426 : vector<8x1xf32> to vector<8x64xf32>
    %428 = arith.subf %422, %427 : vector<8x64xf32>
    %429 = arith.mulf %428, %428 : vector<8x64xf32>
    %cst_141 = arith.constant dense<0.000000e+00> : vector<8xf32>
    %430 = vector.multi_reduction <add>, %429, %cst_141 [1] : vector<8x64xf32> to vector<8xf32>
    %431 = vector.shape_cast %430 : vector<8xf32> to vector<8x1xf32>
    %cst_142 = arith.constant 6.400000e+01 : f32
    %432 = vector.broadcast %cst_142 : f32 to vector<8x1xf32>
    %433 = arith.divf %431, %432 : vector<8x1xf32>
    %434 = vector.broadcast %426 : vector<8x1xf32> to vector<8x64xf32>
    %435 = arith.subf %422, %434 : vector<8x64xf32>
    %cst_143 = arith.constant 9.99999974E-6 : f32
    %436 = vector.broadcast %cst_143 : f32 to vector<8x1xf32>
    %437 = arith.addf %433, %436 : vector<8x1xf32>
    %438 = math.rsqrt %437 : vector<8x1xf32>
    %439 = vector.broadcast %438 : vector<8x1xf32> to vector<8x64xf32>
    %440 = arith.mulf %435, %439 : vector<8x64xf32>
    %441 = vector.broadcast %246 : vector<1x64xf32> to vector<8x64xf32>
    %442 = arith.mulf %440, %441 : vector<8x64xf32>
    %443 = vector.broadcast %247 : vector<1x64xf32> to vector<8x64xf32>
    %444 = arith.addf %442, %443 : vector<8x64xf32>
    %c0_144 = arith.constant 0 : index
    %c0_145 = arith.constant 0 : index
    %c0_146 = arith.constant 0 : index
    %445 = vector.load %arg11[%c0_144, %c0_145, %c0_146] : memref<1x8x64xf32, #tpu.memory_space<vmem>>, vector<1x8x64xf32>
    %446 = vector.shape_cast %445 : vector<1x8x64xf32> to vector<8x64xf32>
    %447 = vector.shape_cast %444 : vector<8x64xf32> to vector<1x8x64xf32>
    tpu.vector_store %arg11[%c0_144, %c0_145, %c0_146], %447 {strides = array<i32>} : memref<1x8x64xf32, #tpu.memory_space<vmem>>, vector<1x8x64xf32>,
    return
  }
  func.func @transform_0(%arg0: i32) -> (i32, i32, i32) {
    %c0_i32 = arith.constant 0 : i32
    %c0_i32_0 = arith.constant 0 : i32
    %c0_i32_1 = arith.constant 0 : i32
    return %arg0, %c0_i32, %c0_i32_0 : i32, i32, i32
  }
  func.func @transform_1(%arg0: i32) -> (i32, i32, i32) {
    %c0_i32 = arith.constant 0 : i32
    %c0_i32_0 = arith.constant 0 : i32
    %c0_i32_1 = arith.constant 0 : i32
    return %arg0, %c0_i32, %c0_i32_0 : i32, i32, i32
  }
  func.func @transform_2(%arg0: i32) -> (i32, i32) {
    %c0_i32 = arith.constant 0 : i32
    %c0_i32_0 = arith.constant 0 : i32
    %c0_i32_1 = arith.constant 0 : i32
    return %c0_i32, %c0_i32_0 : i32, i32
  }
  func.func @transform_3(%arg0: i32) -> (i32, i32, i32) {
    %c0_i32 = arith.constant 0 : i32
    %c0_i32_0 = arith.constant 0 : i32
    %c0_i32_1 = arith.constant 0 : i32
    %c0_i32_2 = arith.constant 0 : i32
    return %c0_i32, %c0_i32_0, %c0_i32_1 : i32, i32, i32
  }
  func.func @transform_4(%arg0: i32) -> (i32, i32, i32) {
    %c0_i32 = arith.constant 0 : i32
    %c0_i32_0 = arith.constant 0 : i32
    %c0_i32_1 = arith.constant 0 : i32
    %c0_i32_2 = arith.constant 0 : i32
    return %c0_i32, %c0_i32_0, %c0_i32_1 : i32, i32, i32
  }
  func.func @transform_5(%arg0: i32) -> (i32, i32, i32) {
    %c0_i32 = arith.constant 0 : i32
    %c0_i32_0 = arith.constant 0 : i32
    %c0_i32_1 = arith.constant 0 : i32
    %c0_i32_2 = arith.constant 0 : i32
    return %c0_i32, %c0_i32_0, %c0_i32_1 : i32, i32, i32
  }
  func.func @transform_6(%arg0: i32) -> (i32, i32, i32) {
    %c0_i32 = arith.constant 0 : i32
    %c0_i32_0 = arith.constant 0 : i32
    %c0_i32_1 = arith.constant 0 : i32
    %c0_i32_2 = arith.constant 0 : i32
    return %c0_i32, %c0_i32_0, %c0_i32_1 : i32, i32, i32
  }
  func.func @transform_7(%arg0: i32) -> (i32, i32, i32) {
    %c0_i32 = arith.constant 0 : i32
    %c0_i32_0 = arith.constant 0 : i32
    %c0_i32_1 = arith.constant 0 : i32
    %c0_i32_2 = arith.constant 0 : i32
    return %c0_i32, %c0_i32_0, %c0_i32_1 : i32, i32, i32
  }
  func.func @transform_8(%arg0: i32) -> (i32, i32, i32) {
    %c0_i32 = arith.constant 0 : i32
    %c0_i32_0 = arith.constant 0 : i32
    %c0_i32_1 = arith.constant 0 : i32
    %c0_i32_2 = arith.constant 0 : i32
    return %c0_i32, %c0_i32_0, %c0_i32_1 : i32, i32, i32
  }
  func.func @transform_9(%arg0: i32) -> (i32, i32, i32) {
    %c0_i32 = arith.constant 0 : i32
    %c0_i32_0 = arith.constant 0 : i32
    %c0_i32_1 = arith.constant 0 : i32
    %c0_i32_2 = arith.constant 0 : i32
    return %c0_i32, %c0_i32_0, %c0_i32_1 : i32, i32, i32
  }
  func.func @transform_10(%arg0: i32) -> (i32, i32, i32) {
    %c0_i32 = arith.constant 0 : i32
    %c0_i32_0 = arith.constant 0 : i32
    %c0_i32_1 = arith.constant 0 : i32
    return %arg0, %c0_i32, %c0_i32_0 : i32, i32, i32
  }
}

</mosaic_0001>

<bundles_post_ra>
// kernel: tpu_custom_call.1
= control target key start
LH: loop header
LB: loop body
LE: loop exit
PB: predicated region body
PF: predicated region fallthrough
CT: control target
= control target key end

     0   :  { %s6008_s0 = inlined_call_operand.vmem [shape: f32[2,8,64], index: 0, kind: input, shape index: {}]   ;;  %s6009_s1 = inlined_call_operand.vmem [shape: f32[2,1,8], index: 1, kind: input, shape index: {}]   ;;  %s6010_s2 = inlined_call_operand.vmem [shape: f32[8,64], index: 2, kind: input, shape index: {}]   ;;  %s6011_s3 = inlined_call_operand.vmem [shape: f32[2,64,192], index: 3, kind: input, shape index: {}]   ;;  %s6012_s4 = inlined_call_operand.vmem [shape: f32[2,1,192], index: 4, kind: input, shape index: {}]   ;;  %s6013_s5 = inlined_call_operand.vmem [shape: f32[2,64,64], index: 5, kind: input, shape index: {}]   ;;  %s6014_s6 = inlined_call_operand.vmem [shape: f32[2,64,256], index: 6, kind: input, shape index: {}]   ;;  %s6015_s7 = inlined_call_operand.vmem [shape: f32[2,1,256], index: 7, kind: input, shape index: {}]   ;;  %s6016_s8 = inlined_call_operand.vmem [shape: f32[2,256,64], index: 8, kind: input, shape index: {}]   ;;  %s6017_s9 = inlined_call_operand.vmem [shape: f32[2,6,64], index: 9, kind: input, shape index: {}]   ;;  %s6018_s10 = inlined_call_operand.hbm [shape: f32[2,8,64], index: 10, kind: output, shape index: {}]  }
   0x1   :  { %6048 = sst [smem:[#allocation6_spill]] %s6008_s0 }
   0x2   :  { %6049 = sst [smem:[#allocation7_spill]] %s6009_s1 }
   0x3   :  { %6050 = sst [smem:[#allocation8_spill]] %s6010_s2 }
   0x4   :  { %15 = vsyncpa [#allocation3], 0 }
   0x5   :  { %17 = vsyncpa [#allocation3 + $0x1], 0  ;;  %s4986_s13 = smov 0   ;;  %s4988_s14 = smov 0  }
   0x6   :  { %s4990_s15 = smov 0   ;;  %s4992_s16 = smov 0  }
   0x7 LB: > { %s5007_s17 = sadd.s32 4294967295, %s4909_s16   ;;  %s4076_s18 = sadd.s32 4294967294, %s4909_s16   ;;  %s4909_s16 = sphi %s4992_s16, %s6076_s16   ;;  %s4905_s15 = sphi %s4990_s15, %s6075_s15   ;;  %s4901_s14 = sphi %s4988_s14, %s6074_s14   ;;  %s4897_s13 = sphi %s4986_s13, %s6073_s13  }
   0x8   : > { %s5011_s19 = sadd.s32 1, %s4909_s16   ;;  %s250_s20 = sadd.s32 1, %s4905_s15 }
   0x9   : > { %s247_s21 = ssub.s32 %s4909_s16, %s5011_s19  ;;  %p260_p0 = scmp.ne.s32.totalorder %s4905_s15, %s4901_s14 }
   0xa   : > { %p248_p1 = scmp.eq.s32.totalorder %s247_s21, 0  ;;  %p261_p2 = scmp.eq.s32.totalorder %s5007_s17, 1 }
   0xb   : > { %p266_p3 = scmp.ne.s32.totalorder %s4901_s14, %s4897_s13  ;;  %p267_p4 = scmp.eq.s32.totalorder %s4076_s18, 1 }
   0xc   : > { %s5022_s22 = scalar_select %p248_p1, %s4905_s15, %s250_s20  }
   0xd   : > { %p5024_p5 = por %p261_p2, %p260_p0  ;;  %p5028_p6 = por %p267_p4, %p266_p3 }
   0xe   : > { %6051 = sst [smem:[#allocation5_spill]] %s5022_s22  ;;  %p4079_p7 = scmp.ge.s32.totalorder %s4909_s16, 1 }
   0xf   : > { %p322_p8 = scmp.lt.s32.totalorder %s4909_s16, 3 }
  0x11   : > { %p323_p9 = pnand %p4079_p7, %p322_p8 }
  0x12   : > { %v376_v0 = vld [vmem:[%s6011_s3 + $0x8] sm:$0xff] (!%p323_p9)  ;;  %v378_v1 = vld [vmem:[%s6011_s3 + $0x18] sm:$0xff] (!%p323_p9)  ;;  %v375_v2 = vld [vmem:[%s6011_s3] sm:$0xff] (!%p323_p9)  ;;  %p362_p10 = scmp.lt.s32.totalorder (!%p323_p9), %s5007_s17, 1  ;;  %v4911_v7 = vmov (!%p323_p9), 0.0   ;;  %s6054_s0 = sld [smem:[#allocation6_spill]] (!%p323_p9)  ;;  %v451_v28 = vlaneseq (!%p323_p9) }
  0x13   : > { %326 = sbr.rel (%p323_p9) target bundleno = 6172 (0x181c), region = 60  ;;  %v4565_v3 = vpack.c.bf16 (!%p323_p9), %v378_v1, %v376_v0  ;;  %v377_v4 = vld [vmem:[%s6011_s3 + $0x10] sm:$0xff] (!%p323_p9)  ;;  %v380_v5 = vld [vmem:[%s6011_s3 + $0x28] sm:$0xff] (!%p323_p9)  ;;  %v382_v6 = vld [vmem:[%s6011_s3 + $0x38] sm:$0xff] (!%p323_p9)  ;;  %529 = vmatprep.mubr.f32.mxu1 (!%p323_p9), %v4911_v7  ;;  %4387 = vmatprep.subr.mxu0 (!%p323_p9), %v4911_v7  ;;  %s6055_s2 = sld [smem:[#allocation8_spill]] (!%p323_p9)  ;;  %vm461_vm0 = vcmask (!%p323_p9), 523264  }
  0x14   : > { %v4567_v8 = vpack.c.bf16 (!%p323_p9), %v377_v4, %v375_v2  ;;  %v4569_v9 = vpack.c.bf16 (!%p323_p9), %v382_v6, %v380_v5  ;;  %v379_v10 = vld [vmem:[%s6011_s3 + $0x20] sm:$0xff] (!%p323_p9)  ;;  %v381_v11 = vld [vmem:[%s6011_s3 + $0x30] sm:$0xff] (!%p323_p9)  ;;  %v384_v12 = vld [vmem:[%s6011_s3 + $0x48] sm:$0xff] (!%p323_p9)  ;;  %v5100_v29 = vshrl.u32 (!%p323_p9), %v451_v28, 7  ;;  %vm4912_vm1 = vmmov (!%p323_p9), 0   ;;  %s6020_s21 = smov (!%p323_p9), 56  }
  0x15   : > { %4566 = vmatprep.subr.bf16.mxu1 (!%p323_p9), %v4565_v3  ;;  %v386_v13 = vld [vmem:[%s6011_s3 + $0x58] sm:$0xff] (!%p323_p9)  ;;  %v4571_v14 = vpack.c.bf16 (!%p323_p9), %v381_v11, %v379_v10  ;;  %v383_v16 = vld [vmem:[%s6011_s3 + $0x40] sm:$0xff] (!%p323_p9)  ;;  %v385_v17 = vld [vmem:[%s6011_s3 + $0x50] sm:$0xff] (!%p323_p9)  ;;  %4389 = vmatprep.mubr.msk.f32.mxu0 (!%p323_p9), %vm4912_vm1, %v4911_v7  ;;  %s6019_s25 = smov (!%p323_p9), 64   ;;  %s6038_s26 = smov (!%p323_p9), 120   ;;  %vm545_vm2 = vcmask (!%p323_p9), 64512  }
  0x16   : > { %4568 = vmatpush1.bf16.msra.mxu1 (!%p323_p9), %v4567_v8  ;;  %v4573_v15 = vpack.c.bf16 (!%p323_p9), %v386_v13, %v384_v12  ;;  %v388_v18 = vld [vmem:[%s6011_s3 + $0x68] sm:$0xff] (!%p323_p9)  ;;  %v390_v19 = vld [vmem:[%s6011_s3 + $0x78] sm:$0xff] (!%p323_p9)  ;;  %v4575_v20 = vpack.c.bf16 (!%p323_p9), %v385_v17, %v383_v16  ;;  %v387_v22 = vld [vmem:[%s6011_s3 + $0x60] sm:$0xff] (!%p323_p9)  ;;  %v5107_v30 = vsub.s32 (!%p323_p9), 0, %v5100_v29  ;;  %s6022_s27 = smov (!%p323_p9), 48   ;;  %s6036_s28 = smov (!%p323_p9), 112  }
  0x17   : > { %4570 = vmatprep.subr.bf16.mxu1 (!%p323_p9), %v4569_v9  ;;  %v4577_v21 = vpack.c.bf16 (!%p323_p9), %v390_v19, %v388_v18  ;;  %v389_v23 = vld [vmem:[%s6011_s3 + $0x70] sm:$0xff] (!%p323_p9)  ;;  %v391_v31 = vld [vmem:[%s6012_s4] sm:$0x3] (!%p323_p9)  ;;  %s6040_s30 = smov (!%p323_p9), 32   ;;  %v5130_v36 = vsub.s32 (!%p323_p9), 1, %v5100_v29  ;;  %s6056_s1 = sld [smem:[#allocation7_spill]] (!%p323_p9) }
  0x18   : > { %v4579_v24 = vpack.c.bf16 (!%p323_p9), %v389_v23, %v387_v22  ;;  %v454_v32 = vrot.slane (!%p323_p9), %v391_v31, %v5107_v30  ;;  %v4920_v46 = vmov (!%p323_p9), -1e+09   ;;  %s6026_s11 = smov (!%p323_p9), 72   ;;  %vm1889_vm4 = vcmask (!%p323_p9), 130048   ;;  %s6069_s22 = smov (!%p323_p9), 88  }
  0x19   : > { %v370_v26 = vld [vmem:[%s6055_s2] sm:$0xff] (!%p323_p9)  ;;  %v458_v37 = vrot.slane (!%p323_p9), %v391_v31, %v5130_v36  ;;  %vm1891_vm5 = vcmask (!%p323_p9), 195584   ;;  %vm1893_vm6 = vcmask (!%p323_p9), 261120   ;;  %vm1895_vm7 = vcmask (!%p323_p9), 326656   ;;  %s6067_s2 = smov (!%p323_p9), 104  }
  0x1a   : > { %s5065_s12 = scalar_select %p362_p10, %s5007_s17, 1  ;;  %4572 = vmatpush1.bf16.msra.mxu1 %v4571_v14  ;;  %vm1897_vm8 = vcmask 392192   ;;  %vm1899_vm9 = vcmask 457728  }
  0x1b   : > { %4574 = vmatprep.subr.bf16.mxu1 %v4573_v15 }
  0x1c   : > { %s4081_s18 = sshll.u32 %s5065_s12, 3 }
  0x1d   : > { %s365_s29 = scalar_lea.vmem %s6054_s0, %s4081_s18  ;;  %s368_s20 = scalar_lea.vmem %s6056_s1, %s5065_s12 }
  0x1e   : > { %4576 = vmatpush1.bf16.msra.mxu1 %v4575_v20  ;;  %v369_v25 = vld [vmem:[%s365_s29] sm:$0xff]  ;;  %s6024_s29 = smov 40   ;;  %s6028_s12 = smov 80  }
  0x1f   : > { %4578 = vmatprep.subr.bf16.mxu1 %v4577_v21  ;;  %v5095_v27 = vadd.f32 %v370_v26, %v369_v25  ;;  %v372_v45 = vld [vmem:[%s368_s20] sm:$0x1]  ;;  %s6032_s18 = smov 96   ;;  %s6046_s20 = smov 24  }
  0x20   : > { %vm373_vm3 = vcmp.gt.f32.partialorder %v372_v45, 0.5  ;;  %s6064_s0 = smov 16   ;;  %s6066_s1 = smov 112  }
  0x21   : > { %v374_v47 = vsel %vm373_vm3, 0.0, %v4920_v46 }
  0x22   : > { %4580 = vmatpush1.bf16.msra.mxu1 %v4579_v24  ;;  %v5159_v48 = vrot.slane %v374_v47, %v5107_v30 }
  0x23   : > { %4367 = vmatprep.subr.mxu1 %v4911_v7 }
  0x25   : > { %4082 = vmatmul.mubr.msk.f32.vlgmr.msra.gmra.mrb[0].mxu1 %vm461_vm0, %v5095_v27 }
  0x26   : > { %4369 = vmatprep.mubr.msk.f32.mxu1 %vm4912_vm1, %v4911_v7 }
  0xf8   : > { %v531_v33 = vpop.f32.mrb[0].mxu1 }
  0xf9   : > { %v5113_v34 = vadd.f32 %v531_v33, %v454_v32  ;;  %v533_v35 = vpop.f32.mrb[1].mxu1 }
  0xfa   : > { %v5137_v40 = vadd.f32 %v533_v35, %v458_v37 }
  0xfb   : > { %706 = vrot.lane.b32.xlu1 %v5113_v34, %s6020_s21  ;;  %543 = vrot.lane.b32.xlu0 %v5113_v34, %s6019_s25  ;;  %s6034_s25 = smov 104   ;;  %s6030_s21 = smov 88  }
  0xff   : > { %704 = vrot.lane.b32.xlu1 %v5113_v34, %s6038_s26 }
 0x103   : > { %872 = vrot.lane.b32.xlu1 %v5113_v34, %s6022_s27  ;;  %s6044_s27 = smov 16  }
 0x107   : > { %870 = vrot.lane.b32.xlu1 %v5113_v34, %s6036_s28 }
 0x10b   : > { %1037 = vrot.lane.b32.xlu1 %v5113_v34, %s6024_s29  ;;  %s6042_s29 = smov 8  }
 0x10f   : > { %1202 = vrot.lane.b32.xlu1 %v5113_v34, %s6040_s30  ;;  %s6070_s30 = smov 80  }
 0x16d   : > { %v5133_v38 = vpop.permute.xlu1 %706  ;;  %v544_v39 = vpop.permute.xlu0 %543 }
 0x16e   : > { %4368 = vmatpush3.xpose.msk.msra.mxu1 %vm545_vm2, %v544_v39 }
 0x16f   : > { %4372 = vmatprep.subr.mxu1 %v4911_v7 }
 0x171   : > { %v5139_v41 = vpop.permute.xlu1 %704  ;;  %4370 = vmatmul.mubr.msk.f32.vlgmr.msra.gmra.mrb[2].mxu1 %vm545_vm2, %v5113_v34 }
 0x172   : > { %4373 = vmatpush3.msra.mxu1 %v5137_v40  ;;  %4374 = vmatprep.mubr.msk.f32.mxu1 %vm4912_vm1, %v4911_v7 }
 0x173   : > { %4377 = vmatprep.subr.mxu1 %v4911_v7 }
 0x175   : > { %v873_v42 = vpop.permute.xlu1 %872 }
 0x176   : > { %4388 = vmatpush3.xpose.msk.msra.mxu0 %vm545_vm2, %v873_v42 }
 0x177   : > { %4397 = vmatprep.subr.mxu0 %v4911_v7 }
 0x179   : > { %v871_v43 = vpop.permute.xlu1 %870 }
 0x17a   : > { %4390 = vmatmul.mubr.msk.f32.vlgmr.msra.gmra.mrb[0].mxu0 %vm545_vm2, %v871_v43 }
 0x17b   : > { %4399 = vmatprep.mubr.msk.f32.mxu0 %vm4912_vm1, %v4911_v7 }
 0x17d   : > { %v1038_v44 = vpop.permute.xlu1 %1037 }
 0x17e   : > { %4398 = vmatpush3.xpose.msk.msra.mxu0 %vm545_vm2, %v1038_v44 }
 0x17f   : > { %4407 = vmatprep.subr.mxu0 %v4911_v7 }
 0x181   : > { %v1203_v61 = vpop.permute.xlu1 %1202 }
 0x244   : > { %v616_v49 = vpop.f32.mrb[2].mxu1 }
 0x245   : > { %v617_v50 = vadd.f32 %v616_v49, %v5159_v48  ;;  %v4371_v51 = vpop.f32.mrb[3].mxu1 }
 0x247   : > { %v620_v52 = vsel %vm545_vm2, %v617_v50, -inf }
 0x248   : > { %621 = vmax.xlane.f32.xlu0 %v620_v52 }
 0x24d   : > { %v944_v53 = vpop.f32.mrb[0].mxu0 }
 0x24e   : > { %v4391_v54 = vpop.f32.mrb[1].mxu0  ;;  %v5170_v55 = vadd.f32 %v944_v53, %v5159_v48 }
 0x250   : > { %v948_v56 = vsel %vm545_vm2, %v5170_v55, -inf }
 0x25e   : > { %1035 = vrot.lane.b32.xlu0 %v5113_v34, %s6034_s25 }
 0x262   : > { %1530 = vrot.lane.b32.xlu0 %v5113_v34, %s6028_s12 }
 0x266   : > { %1695 = vrot.lane.b32.xlu0 %v5113_v34, %s6026_s11 }
 0x285   : > { %949 = vmax.xlane.f32.xlu0 %v948_v56 }
 0x2d5   : > { %v622_v57 = vpop.xlane.xlu0 %621 }
 0x2d6   : > { %v623_v58 = vsub.f32 %v617_v50, %v622_v57 }
 0x2d8   : > { %v624_v59 = vmul.f32 1.442695, %v623_v58 }
 0x2d9   : > { %v1036_v60 = vpop.permute.xlu0 %1035 }
 0x2da   : > { %4775 = vpow2.f32 %v624_v59  ;;  %4400 = vmatmul.mubr.msk.f32.vlgmr.msra.gmra.mrb[2].mxu0 %vm545_vm2, %v1036_v60 }
 0x2db   : > { %4408 = vmatpush3.xpose.msk.msra.mxu0 %vm545_vm2, %v1203_v61  ;;  %4409 = vmatprep.mubr.msk.f32.mxu0 %vm4912_vm1, %v4911_v7 }
 0x2dc   : > { %4417 = vmatprep.subr.mxu0 %v4911_v7 }
 0x2dd   : > { %v1531_v8 = vpop.permute.xlu0 %1530 }
 0x2e1   : > { %v1696_v10 = vpop.permute.xlu0 %1695 }
 0x2e4   : > { %v4776_v62 = vpop.eup %4775 }
 0x2e5   : > { %v626_v63 = vsel %vm545_vm2, %v4776_v62, 0.0 }
 0x2e6   : > { %627 = vadd.xlane.f32.xlu1 %v626_v63 }
 0x2f7   : > { %1200 = vrot.lane.b32.xlu1 %v5113_v34, %s6032_s18 }
 0x2fb   : > { %1367 = vrot.lane.b32.xlu1 %v5113_v34, %s6046_s20 }
 0x2ff   : > { %1365 = vrot.lane.b32.xlu1 %v5113_v34, %s6030_s21 }
 0x303   : > { %1532 = vrot.lane.b32.xlu1 %v5113_v34, %s6044_s27 }
 0x307   : > { %1697 = vrot.lane.b32.xlu1 %v5113_v34, %s6042_s29 }
 0x312   : > { %v950_v15 = vpop.xlane.xlu0 %949 }
 0x313   : > { %v951_v19 = vsub.f32 %v5170_v55, %v950_v15 }
 0x315   : > { %v952_v22 = vmul.f32 1.442695, %v951_v19 }
 0x373   : > { %v628_v0 = vpop.xlane.xlu1 %627 }
 0x374   : > { %4777 = vrcp.f32 %v628_v0 }
 0x375   : > { %4779 = vpow2.f32 %v952_v22 }
 0x377   : > { %v1201_v1 = vpop.permute.xlu1 %1200 }
 0x378   : > { %4410 = vmatmul.mubr.msk.f32.vlgmr.msra.gmra.mrb[4].mxu0 %vm545_vm2, %v1201_v1 }
 0x379   : > { %4419 = vmatprep.mubr.msk.f32.mxu0 %vm4912_vm1, %v4911_v7 }
 0x37b   : > { %v1368_v2 = vpop.permute.xlu1 %1367 }
 0x37c   : > { %4418 = vmatpush3.xpose.msk.msra.mxu0 %vm545_vm2, %v1368_v2 }
 0x37d   : > { %4427 = vmatprep.subr.mxu0 %v4911_v7 }
 0x37e   : > { %v4778_v3 = vpop.eup %4777 }
 0x37f   : > { %v630_v4 = vmul.f32 %v4778_v3, %v4776_v62  ;;  %v1366_v5 = vpop.permute.xlu1 %1365  ;;  %v5231_v47 = vpop.eup %4779 }
 0x380   : > { %4420 = vmatmul.mubr.msk.f32.vlgmr.msra.gmra.mrb[6].mxu0 %vm545_vm2, %v1366_v5  ;;  %v954_v51 = vsel %vm545_vm2, %v5231_v47, 0.0 }
 0x381   : > { %4375 = vmatmul.mubr.msk.f32.vlgmr.msra.gmra.mrb[4].mxu1 %vm545_vm2, %v630_v4  ;;  %4429 = vmatprep.mubr.msk.f32.mxu0 %vm4912_vm1, %v4911_v7 }
 0x382   : > { %4378 = vmatpush3.xpose.msk.msra.mxu1 %vm545_vm2, %v5133_v38  ;;  %4379 = vmatprep.mubr.msk.f32.mxu1 %vm4912_vm1, %v4911_v7 }
 0x383   : > { %v1533_v6 = vpop.permute.xlu1 %1532  ;;  %4382 = vmatprep.subr.mxu1 %v4911_v7 }
 0x384   : > { %4428 = vmatpush3.xpose.msk.msra.mxu0 %vm545_vm2, %v1533_v6 }
 0x385   : > { %4380 = vmatmul.mubr.msk.f32.vlgmr.msra.gmra.mrb[6].mxu1 %vm545_vm2, %v5139_v41  ;;  %4437 = vmatprep.subr.mxu0 %v4911_v7 }
 0x386   : > { %4384 = vmatprep.mubr.msk.f32.mxu1 %vm4912_vm1, %v4911_v7 }
 0x387   : > { %v1698_v9 = vpop.permute.xlu1 %1697  ;;  %4430 = vmatmul.mubr.msk.f32.vlgmr.msra.gmra.mrb[8].mxu0 %vm545_vm2, %v1531_v8 }
 0x388   : > { %4438 = vmatpush3.xpose.msk.msra.mxu0 %vm545_vm2, %v1698_v9  ;;  %4439 = vmatprep.mubr.msk.f32.mxu0 %vm4912_vm1, %v4911_v7 }
 0x38b   : > { %4440 = vmatmul.mubr.msk.f32.vlgmr.msra.gmra.mrb[10].mxu0 %vm545_vm2, %v1696_v10 }
 0x38c   : > { %4463 = vmatprep.mubr.msk.f32.mxu0 %vm4912_vm1, %v4911_v7 }
 0x3ad   : > { %v1109_v11 = vpop.f32.mrb[2].mxu0 }
 0x3ae   : > { %v1110_v12 = vadd.f32 %v1109_v11, %v5159_v48  ;;  %v4401_v13 = vpop.f32.mrb[3].mxu0 }
 0x3b0   : > { %v1113_v14 = vsel %vm545_vm2, %v1110_v12, -inf }
 0x3b1   : > { %1114 = vmax.xlane.f32.xlu0 %v1113_v14 }
 0x43e   : > { %v1115_v18 = vpop.xlane.xlu0 %1114 }
 0x43f   : > { %v1116_v20 = vsub.f32 %v1110_v12, %v1115_v18 }
 0x441   : > { %v1117_v28 = vmul.f32 1.442695, %v1116_v20 }
 0x443   : > { %4781 = vpow2.f32 %v1117_v28 }
 0x44b   : > { %v1274_v16 = vpop.f32.mrb[4].mxu0 }
 0x44c   : > { %v4411_v17 = vpop.f32.mrb[5].mxu0  ;;  %v1275_v37 = vadd.f32 %v1274_v16, %v5159_v48 }
 0x44d   : > { %v5234_v50 = vpop.eup %4781 }
 0x44e   : > { %v1278_v45 = vsel %vm545_vm2, %v1275_v37, -inf  ;;  %v1119_v52 = vsel %vm545_vm2, %v5234_v50, 0.0 }
 0x453   : > { %v1439_v21 = vpop.f32.mrb[6].mxu0 }
 0x454   : > { %v1440_v23 = vadd.f32 %v1439_v21, %v5159_v48  ;;  %v5221_v24 = vpop.f32.mrb[4].mxu1  ;;  %v4421_v25 = vpop.f32.mrb[7].mxu0 }
 0x455   : > { %v4376_v26 = vpop.f32.mrb[5].mxu1 }
 0x456   : > { %v1443_v31 = vsel %vm545_vm2, %v1440_v23, -inf }
 0x457   : > { %1444 = vmax.xlane.f32.xlu0 %v1443_v31 }
 0x458   : > { %v778_v32 = vpop.f32.mrb[6].mxu1 }
 0x459   : > { %v779_v33 = vadd.f32 %v778_v32, %v5159_v48  ;;  %v4381_v34 = vpop.f32.mrb[7].mxu1 }
 0x45a   : > { %v1604_v35 = vpop.f32.mrb[8].mxu0 }
 0x45b   : > { %v4431_v38 = vpop.f32.mrb[9].mxu0  ;;  %v782_v39 = vsel %vm545_vm2, %v779_v33, -inf  ;;  %v1605_v42 = vadd.f32 %v1604_v35, %v5159_v48 }
 0x45c   : > { %783 = vmax.xlane.f32.xlu1 %v782_v39 }
 0x45d   : > { %v1608_v49 = vsel %vm545_vm2, %v1605_v42, -inf }
 0x45e   : > { %v1769_v41 = vpop.f32.mrb[10].mxu0 }
 0x45f   : > { %v1770_v43 = vadd.f32 %v1769_v41, %v5159_v48  ;;  %v4441_v44 = vpop.f32.mrb[11].mxu0 }
 0x460   : > { %1279 = vmax.xlane.f32.xlu1 %v1278_v45 }
 0x461   : > { %v1773_v46 = vsel %vm545_vm2, %v1770_v43, -inf }
 0x462   : > { %1774 = vmax.xlane.f32.xlu0 %v1773_v46 }
 0x464   : > { %1609 = vmax.xlane.f32.xlu1 %v1608_v49  ;;  %v392_v49 = vld [vmem:[%s6013_s5] sm:$0xff] }
 0x466   : > { %955 = vadd.xlane.f32.xlu0 %v954_v51  ;;  %v4929_v51 = vmov 0.0|0.0  }
 0x467   : > { %4581 = vmatprep.subr.bf16.mxu0 %v4929_v51 }
 0x468   : > { %1120 = vadd.xlane.f32.xlu1 %v1119_v52 }
 0x4e4   : > { %v1445_v53 = vpop.xlane.xlu0 %1444 }
 0x4e5   : > { %v1446_v54 = vsub.f32 %v1440_v23, %v1445_v53 }
 0x4e7   : > { %v1447_v55 = vmul.f32 1.442695, %v1446_v54  ;;  %v394_v54 = vld [vmem:[%s6013_s5 + $0x10] sm:$0xff] }
 0x4e9   : > { %4783 = vpow2.f32 %v1447_v55  ;;  %v784_v56 = vpop.xlane.xlu1 %783  ;;  %v395_v55 = vld [vmem:[%s6013_s5 + $0x18] sm:$0xff] }
 0x4ea   : > { %v785_v11 = vsub.f32 %v779_v33, %v784_v56 }
 0x4ec   : > { %v786_v12 = vmul.f32 1.442695, %v785_v11 }
 0x4ed   : > { %v1280_v57 = vpop.xlane.xlu1 %1279 }
 0x4ee   : > { %v1281_v58 = vsub.f32 %v1275_v37, %v1280_v57  ;;  %v4585_v57 = vpack.c.bf16 %v395_v55, %v394_v54  ;;  %v406_v54 = vld [vmem:[%s6014_s6 + $0x30] sm:$0xff] }
 0x4ef   : > { %v1775_v59 = vpop.xlane.xlu0 %1774 }
 0x4f0   : > { %v1282_v60 = vmul.f32 1.442695, %v1281_v58  ;;  %v1776_v61 = vsub.f32 %v1770_v43, %v1775_v59  ;;  %v396_v59 = vld [vmem:[%s6013_s5 + $0x20] sm:$0xff] }
 0x4f1   : > { %v1610_v62 = vpop.xlane.xlu1 %1609 }
 0x4f2   : > { %4785 = vpow2.f32 %v1282_v60  ;;  %v1777_v63 = vmul.f32 1.442695, %v1776_v61  ;;  %v1611_v0 = vsub.f32 %v1605_v42, %v1610_v62  ;;  %v397_v60 = vld [vmem:[%s6013_s5 + $0x28] sm:$0xff] }
 0x4f3   : > { %v5240_v1 = vpop.eup %4783  ;;  %v956_v15 = vpop.xlane.xlu0 %955  ;;  %v4588_v62 = vpack.c.bf16 %v397_v60, %v396_v59  ;;  %v408_v59 = vld [vmem:[%s6014_s6 + $0x40] sm:$0xff]  ;;  %v410_v60 = vld [vmem:[%s6014_s6 + $0x50] sm:$0xff] }
 0x4f4   : > { %4787 = vpow2.f32 %v1777_v63  ;;  %v1612_v2 = vmul.f32 1.442695, %v1611_v0  ;;  %v1449_v3 = vsel %vm545_vm2, %v5240_v1, 0.0  ;;  %v398_v0 = vld [vmem:[%s6013_s5 + $0x30] sm:$0xff] }
 0x4f5   : > { %1450 = vadd.xlane.f32.xlu1 %v1449_v3  ;;  %v1121_v19 = vpop.xlane.xlu1 %1120 }
 0x4f6   : > { %4789 = vpow2.f32 %v1612_v2 }
 0x4f7   : > { %4791 = vpow2.f32 %v786_v12 }
 0x4fc   : > { %v4786_v4 = vpop.eup %4785 }
 0x4fd   : > { %v1284_v5 = vsel %vm545_vm2, %v4786_v4, 0.0 }
 0x4fe   : > { %v5245_v6 = vpop.eup %4787  ;;  %1285 = vadd.xlane.f32.xlu0 %v1284_v5 }
 0x4ff   : > { %v1779_v8 = vsel %vm545_vm2, %v5245_v6, 0.0 }
 0x500   : > { %v5249_v9 = vpop.eup %4789  ;;  %1780 = vadd.xlane.f32.xlu1 %v1779_v8 }
 0x501   : > { %v1614_v10 = vsel %vm545_vm2, %v5249_v9, 0.0  ;;  %v4792_v13 = vpop.eup %4791 }
 0x502   : > { %1615 = vadd.xlane.f32.xlu0 %v1614_v10  ;;  %v788_v14 = vsel %vm545_vm2, %v4792_v13, 0.0 }
 0x511   : > { %959 = vrot.lane.b32.xlu1 %v5137_v40, %s6036_s28  ;;  %s6068_s28 = smov 96  }
 0x518   : > { %794 = vrot.lane.b32.xlu0 %v5137_v40, %s6038_s26  ;;  %s6061_s26 = smov 64  }
 0x51c   : > { %1289 = vrot.lane.b32.xlu0 %v5137_v40, %s6032_s18  ;;  %s6060_s18 = smov 56  }
 0x520   : > { %1619 = vrot.lane.b32.xlu0 %v5137_v40, %s6028_s12  ;;  %s6058_s12 = smov 40  }
 0x535   : > { %789 = vadd.xlane.f32.xlu1 %v788_v14 }
 0x546   : > { %1124 = vrot.lane.b32.xlu1 %v5137_v40, %s6034_s25  ;;  %s6071_s25 = smov 72  }
 0x54a   : > { %1454 = vrot.lane.b32.xlu1 %v5137_v40, %s6030_s21  ;;  %s6057_s21 = smov 32  }
 0x54e   : > { %1784 = vrot.lane.b32.xlu1 %v5137_v40, %s6026_s11  ;;  %s6059_s11 = smov 48  }
 0x582   : > { %v1451_v20 = vpop.xlane.xlu1 %1450 }
 0x58b   : > { %v1286_v16 = vpop.xlane.xlu0 %1285 }
 0x58d   : > { %v1781_v21 = vpop.xlane.xlu1 %1780 }
 0x58f   : > { %v1616_v17 = vpop.xlane.xlu0 %1615 }
 0x591   : > { %v960_v22 = vpop.permute.xlu1 %959 }
 0x593   : > { %v795_v18 = vpop.permute.xlu0 %794 }
 0x594   : > { %4383 = vmatpush3.msra.mxu1 %v795_v18 }
 0x595   : > { %4392 = vmatprep.subr.mxu1 %v4911_v7 }
 0x597   : > { %v1290_v35 = vpop.permute.xlu0 %1289 }
 0x59b   : > { %v1620_v43 = vpop.permute.xlu0 %1619 }
 0x5c2   : > { %v790_v23 = vpop.xlane.xlu1 %789 }
 0x5c3   : > { %4793 = vrcp.f32 %v790_v23 }
 0x5c4   : > { %4795 = vrcp.f32 %v956_v15 }
 0x5c5   : > { %4797 = vrcp.f32 %v1121_v19 }
 0x5c6   : > { %4799 = vrcp.f32 %v1286_v16  ;;  %v1125_v32 = vpop.permute.xlu1 %1124 }
 0x5c7   : > { %4801 = vrcp.f32 %v1451_v20 }
 0x5c8   : > { %4803 = vrcp.f32 %v1616_v17 }
 0x5c9   : > { %4805 = vrcp.f32 %v1781_v21 }
 0x5ca   : > { %v1455_v39 = vpop.permute.xlu1 %1454 }
 0x5cd   : > { %v4794_v25 = vpop.eup %4793 }
 0x5ce   : > { %v792_v26 = vmul.f32 %v4794_v25, %v4792_v13  ;;  %v4796_v28 = vpop.eup %4795  ;;  %v1785_v46 = vpop.permute.xlu1 %1784 }
 0x5cf   : > { %v958_v40 = vmul.f32 %v4796_v28, %v5231_v47  ;;  %v4798_v31 = vpop.eup %4797 }
 0x5d0   : > { %4385 = vmatmul.mubr.msk.f32.vlgmr.msra.gmra.mrb[8].mxu1 %vm545_vm2, %v792_v26  ;;  %v1123_v33 = vmul.f32 %v4798_v31, %v5234_v50  ;;  %v4800_v34 = vpop.eup %4799  ;;  %v393_v50 = vld [vmem:[%s6013_s5 + $0x8] sm:$0xff] }
 0x5d1   : > { %4393 = vmatpush3.msra.mxu1 %v960_v22  ;;  %4394 = vmatprep.mubr.msk.f32.mxu1 %vm4912_vm1, %v4911_v7  ;;  %v1288_v37 = vmul.f32 %v4800_v34, %v4786_v4  ;;  %v4802_v38 = vpop.eup %4801  ;;  %v4582_v52 = vpack.c.bf16 %v393_v50, %v392_v49  ;;  %v405_v49 = vld [vmem:[%s6014_s6 + $0x28] sm:$0xff]  ;;  %v407_v50 = vld [vmem:[%s6014_s6 + $0x38] sm:$0xff] }
 0x5d2   : > { %4402 = vmatprep.subr.mxu1 %v4911_v7  ;;  %v1453_v41 = vmul.f32 %v4802_v38, %v5240_v1  ;;  %v4804_v42 = vpop.eup %4803  ;;  %v399_v1 = vld [vmem:[%s6013_s5 + $0x38] sm:$0xff] }
 0x5d3   : > { %v1618_v44 = vmul.f32 %v4804_v42, %v5249_v9  ;;  %v4806_v45 = vpop.eup %4805  ;;  %4583 = vmatpush3.bf16.msra.mxu0 %v4582_v52  ;;  %v4591_v3 = vpack.c.bf16 %v399_v1, %v398_v0  ;;  %v4597_v52 = vpack.c.bf16 %v407_v50, %v405_v49  ;;  %v412_v0 = vld [vmem:[%s6014_s6 + $0x60] sm:$0xff] }
 0x5d4   : > { %4395 = vmatmul.mubr.msk.f32.vlgmr.msra.gmra.mrb[10].mxu1 %vm545_vm2, %v958_v40  ;;  %v1783_v47 = vmul.f32 %v4806_v45, %v5245_v6  ;;  %4584 = vmatprep.subr.bf16.mxu0 %v4929_v51  ;;  %v400_v45 = vld [vmem:[%s6014_s6] sm:$0xff] }
 0x5d5   : > { %4403 = vmatpush3.msra.mxu1 %v1125_v32  ;;  %4404 = vmatprep.mubr.msk.f32.mxu1 %vm4912_vm1, %v4911_v7 }
 0x5d6   : > { %4412 = vmatprep.subr.mxu1 %v4911_v7 }
 0x5d7   : > { %4586 = vmatpush3.bf16.msra.mxu0 %v4585_v57  ;;  %v411_v57 = vld [vmem:[%s6014_s6 + $0x58] sm:$0xff] }
 0x5d8   : > { %4405 = vmatmul.mubr.msk.f32.vlgmr.msra.gmra.mrb[12].mxu1 %vm545_vm2, %v1123_v33  ;;  %4587 = vmatprep.subr.bf16.mxu0 %v4929_v51 }
 0x5d9   : > { %4413 = vmatpush3.msra.mxu1 %v1290_v35  ;;  %4414 = vmatprep.mubr.msk.f32.mxu1 %vm4912_vm1, %v4911_v7 }
 0x5da   : > { %4422 = vmatprep.subr.mxu1 %v4911_v7 }
 0x5db   : > { %4589 = vmatpush3.bf16.msra.mxu0 %v4588_v62  ;;  %v413_v62 = vld [vmem:[%s6014_s6 + $0x68] sm:$0xff] }
 0x5dc   : > { %4415 = vmatmul.mubr.msk.f32.vlgmr.msra.gmra.mrb[14].mxu1 %vm545_vm2, %v1288_v37  ;;  %4590 = vmatprep.subr.bf16.mxu0 %v4929_v51 }
 0x5dd   : > { %4423 = vmatpush3.msra.mxu1 %v1455_v39  ;;  %4424 = vmatprep.mubr.msk.f32.mxu1 %vm4912_vm1, %v4911_v7 }
 0x5de   : > { %4432 = vmatprep.subr.mxu1 %v4911_v7 }
 0x5df   : > { %4592 = vmatpush3.bf16.msra.mxu0 %v4591_v3 }
 0x5e0   : > { %4425 = vmatmul.mubr.msk.f32.vlgmr.msra.gmra.mrb[16].mxu1 %vm545_vm2, %v1453_v41 }
 0x5e1   : > { %4433 = vmatpush3.msra.mxu1 %v1620_v43  ;;  %4434 = vmatprep.mubr.msk.f32.mxu1 %vm4912_vm1, %v4911_v7  ;;  %v401_v43 = vld [vmem:[%s6014_s6 + $0x8] sm:$0xff] }
 0x5e2   : > { %4442 = vmatprep.subr.mxu1 %v4911_v7 }
 0x5e4   : > { %4435 = vmatmul.mubr.msk.f32.vlgmr.msra.gmra.mrb[18].mxu1 %vm545_vm2, %v1618_v44 }
 0x5e5   : > { %4443 = vmatpush3.msra.mxu1 %v1785_v46  ;;  %4444 = vmatprep.mubr.msk.f32.mxu1 %vm4912_vm1, %v4911_v7  ;;  %v402_v46 = vld [vmem:[%s6014_s6 + $0x10] sm:$0xff] }
 0x5e8   : > { %4445 = vmatmul.mubr.msk.f32.vlgmr.msra.gmra.mrb[20].mxu1 %vm545_vm2, %v1783_v47  ;;  %v4595_v47 = vpack.c.bf16 %v402_v46, %v400_v45  ;;  %v445_v45 = vld [vmem:[%s6016_s8 + $0xe0] sm:$0xff]  ;;  %v446_v46 = vld [vmem:[%s6016_s8 + $0xe8] sm:$0xff] }
 0x5e9   : > { %2081 = vmatprep.mubr.f32.mxu1 %v4911_v7  ;;  %v4633_v49 = vpack.c.bf16 %v446_v46, %v445_v45  ;;  %v4118_v45 = vld [vmem:[%s6011_s3 + $0xc8] sm:$0xff]  ;;  %v4120_v46 = vld [vmem:[%s6011_s3 + $0xd8] sm:$0xff] }
 0x6a3   : > { %v866_v53 = vpop.f32.mrb[8].mxu1 }
 0x6a4   : > { %1861 = vrot.lane.b32.xlu0 %v866_v53, %s6042_s29  ;;  %v4386_v56 = vpop.f32.mrb[9].mxu1  ;;  %v404_v53 = vld [vmem:[%s6014_s6 + $0x20] sm:$0xff]  ;;  %s6063_s29 = smov 24  }
 0x6a5   : > { %v4599_v55 = vpack.c.bf16 %v406_v54, %v404_v53  ;;  %v409_v56 = vld [vmem:[%s6014_s6 + $0x48] sm:$0xff]  ;;  %v1995_v54 = vsub.s32 2, %v5100_v29 }
 0x6a7   : > { %v1031_v58 = vpop.f32.mrb[10].mxu1 }
 0x6a8   : > { %1865 = vrot.lane.b32.xlu1 %v1031_v58, %s6044_s27  ;;  %v4396_v61 = vpop.f32.mrb[11].mxu1  ;;  %v4601_v58 = vpack.c.bf16 %v411_v57, %v409_v56  ;;  %s6062_s27 = smov 120  }
 0x6a9   : > { %v4603_v61 = vpack.c.bf16 %v410_v60, %v408_v59 }
 0x6ab   : > { %v1196_v63 = vpop.f32.mrb[12].mxu1 }
 0x6ac   : > { %1869 = vrot.lane.b32.xlu0 %v1196_v63, %s6046_s20  ;;  %v4406_v2 = vpop.f32.mrb[13].mxu1  ;;  %v415_v63 = vld [vmem:[%s6014_s6 + $0x78] sm:$0xff]  ;;  %s6065_s20 = smov 8  }
 0x6ad   : > { %v4605_v1 = vpack.c.bf16 %v415_v63, %v413_v62  ;;  %v414_v2 = vld [vmem:[%s6014_s6 + $0x70] sm:$0xff]  ;;  %v429_v62 = vld [vmem:[%s6016_s8 + $0x60] sm:$0xff]  ;;  %v430_v63 = vld [vmem:[%s6016_s8 + $0x68] sm:$0xff] }
 0x6ae   : > { %v4607_v3 = vpack.c.bf16 %v414_v2, %v412_v0  ;;  %v4635_v0 = vpack.c.bf16 %v430_v63, %v429_v62 }
 0x6af   : > { %v1361_v4 = vpop.f32.mrb[14].mxu1 }
 0x6b0   : > { %1873 = vrot.lane.b32.xlu1 %v1361_v4, %s6057_s21  ;;  %v4416_v5 = vpop.f32.mrb[15].mxu1  ;;  %v433_v4 = vld [vmem:[%s6016_s8 + $0x80] sm:$0xff] }
 0x6b1   : > { %v434_v5 = vld [vmem:[%s6016_s8 + $0x88] sm:$0xff] }
 0x6b3   : > { %v1526_v6 = vpop.f32.mrb[16].mxu1 }
 0x6b4   : > { %1877 = vrot.lane.b32.xlu0 %v1526_v6, %s6058_s12  ;;  %v4426_v8 = vpop.f32.mrb[17].mxu1  ;;  %v417_v6 = vld [vmem:[%s6016_s8] sm:$0xff] }
 0x6b5   : > { %v4609_v8 = vpack.c.bf16 %v434_v5, %v433_v4  ;;  %v432_v4 = vld [vmem:[%s6016_s8 + $0x78] sm:$0xff] }
 0x6b7   : > { %v1691_v9 = vpop.f32.mrb[18].mxu1  ;;  %4610 = vmatprep.subr.bf16.mxu0 %v4609_v8 }
 0x6b8   : > { %1881 = vrot.lane.b32.xlu1 %v1691_v9, %s6059_s11  ;;  %v4436_v10 = vpop.f32.mrb[19].mxu1  ;;  %v418_v9 = vld [vmem:[%s6016_s8 + $0x8] sm:$0xff] }
 0x6b9   : > { %v435_v10 = vld [vmem:[%s6016_s8 + $0x90] sm:$0xff] }
 0x6bb   : > { %v1856_v11 = vpop.f32.mrb[20].mxu1 }
 0x6bc   : > { %1885 = vrot.lane.b32.xlu0 %v1856_v11, %s6060_s18  ;;  %v4446_v12 = vpop.f32.mrb[21].mxu1  ;;  %v436_v11 = vld [vmem:[%s6016_s8 + $0x98] sm:$0xff] }
 0x6bd   : > { %v4611_v12 = vpack.c.bf16 %v418_v9, %v417_v6  ;;  %v416_v6 = vld [vmem:[%s6015_s7] sm:$0x3] }
 0x6be   : > { %v2007_v8 = vrot.slane %v416_v6, %v5107_v30  ;;  %v2011_v9 = vrot.slane %v416_v6, %v5130_v36 }
 0x716   : > { %v1862_v13 = vpop.permute.xlu0 %1861 }
 0x717   : > { %v1888_v17 = vsel %vm545_vm2, %v5221_v24, %v1862_v13  ;;  %v5346_v24 = vld [vmem:[%s6017_s9] sm:$0x3f]  ;;  %v4613_v13 = vpack.c.bf16 %v436_v11, %v435_v10 }
 0x718   : > { %v1904_v40 = vrot.slane %v5346_v24, %v5107_v30  ;;  %v1996_v56 = vrot.slane %v5346_v24, %v1995_v54 }
 0x71a   : > { %v1866_v14 = vpop.permute.xlu1 %1865 }
 0x71b   : > { %v1890_v18 = vsel %vm1889_vm4, %v1888_v17, %v1866_v14  ;;  %v419_v14 = vld [vmem:[%s6016_s8 + $0x10] sm:$0xff]  ;;  %v438_v17 = vld [vmem:[%s6016_s8 + $0xa8] sm:$0xff] }
 0x71e   : > { %v1870_v15 = vpop.permute.xlu0 %1869 }
 0x71f   : > { %v1892_v20 = vsel %vm1891_vm5, %v1890_v18, %v1870_v15  ;;  %v420_v15 = vld [vmem:[%s6016_s8 + $0x18] sm:$0xff] }
 0x720   : > { %v4615_v18 = vpack.c.bf16 %v420_v15, %v419_v14 }
 0x722   : > { %v1874_v16 = vpop.permute.xlu1 %1873 }
 0x723   : > { %v1894_v22 = vsel %vm1893_vm6, %v1892_v20, %v1874_v16  ;;  %v437_v16 = vld [vmem:[%s6016_s8 + $0xa0] sm:$0xff] }
 0x724   : > { %v421_v20 = vld [vmem:[%s6016_s8 + $0x20] sm:$0xff] }
 0x726   : > { %v1878_v19 = vpop.permute.xlu0 %1877 }
 0x727   : > { %v1896_v23 = vsel %vm1895_vm7, %v1894_v22, %v1878_v19  ;;  %v4617_v19 = vpack.c.bf16 %v438_v17, %v437_v16  ;;  %v439_v22 = vld [vmem:[%s6016_s8 + $0xb0] sm:$0xff]  ;;  %v2093_v17 = vrot.slane %v5346_v24, %v5130_v36 }
 0x72a   : > { %v1882_v21 = vpop.permute.xlu1 %1881 }
 0x72b   : > { %v1898_v25 = vsel %vm1897_vm8, %v1896_v23, %v1882_v21  ;;  %v422_v21 = vld [vmem:[%s6016_s8 + $0x28] sm:$0xff]  ;;  %v440_v23 = vld [vmem:[%s6016_s8 + $0xb8] sm:$0xff] }
 0x72e   : > { %v1886_v26 = vpop.permute.xlu0 %1885 }
 0x72f   : > { %v1900_v28 = vsel %vm1899_vm9, %v1898_v25, %v1886_v26  ;;  %v4619_v25 = vpack.c.bf16 %v422_v21, %v421_v20  ;;  %v4621_v26 = vpack.c.bf16 %v440_v23, %v439_v22 }
 0x730   : > { %4464 = vmatmul.mubr.msk.f32.vlgmr.msra.gmra.mrb[12].mxu0 %vm461_vm0, %v1900_v28  ;;  %v423_v28 = vld [vmem:[%s6016_s8 + $0x30] sm:$0xff] }
 0x731   : > { %4612 = vmatpush3.bf16.msra.mxu0 %v4611_v12 }
 0x732   : > { %4614 = vmatprep.subr.bf16.mxu0 %v4613_v13 }
 0x735   : > { %4616 = vmatpush3.bf16.msra.mxu0 %v4615_v18 }
 0x736   : > { %4618 = vmatprep.subr.bf16.mxu0 %v4617_v19 }
 0x739   : > { %4620 = vmatpush3.bf16.msra.mxu0 %v4619_v25 }
 0x73a   : > { %4622 = vmatprep.subr.bf16.mxu0 %v4621_v26 }
 0x803   : > { %v1974_v31 = vpop.f32.mrb[12].mxu0 }
 0x804   : > { %v1975_v32 = vadd.f32 %v1974_v31, %v1904_v40  ;;  %v4465_v33 = vpop.f32.mrb[13].mxu0  ;;  %v424_v40 = vld [vmem:[%s6016_s8 + $0x38] sm:$0xff]  ;;  %v441_v31 = vld [vmem:[%s6016_s8 + $0xc0] sm:$0xff] }
 0x805   : > { %v4623_v33 = vpack.c.bf16 %v424_v40, %v423_v28 }
 0x806   : > { %v1978_v34 = vadd.f32 %v1975_v32, %v5095_v27  ;;  %v403_v27 = vld [vmem:[%s6014_s6 + $0x18] sm:$0xff]  ;;  %v442_v32 = vld [vmem:[%s6016_s8 + $0xc8] sm:$0xff] }
 0x807   : > { %v4593_v44 = vpack.c.bf16 %v403_v27, %v401_v43  ;;  %4624 = vmatpush3.bf16.msra.mxu0 %v4623_v33  ;;  %v427_v27 = vld [vmem:[%s6016_s8 + $0x50] sm:$0xff] }
 0x808   : > { %v1979_v35 = vsel %vm461_vm0, %v1978_v34, 0.0 }
 0x809   : > { %1980 = vadd.xlane.f32.xlu1 %v1979_v35  ;;  %4594 = vmatprep.subr.bf16.mxu1 %v4593_v44  ;;  %v425_v35 = vld [vmem:[%s6016_s8 + $0x40] sm:$0xff]  ;;  %v428_v44 = vld [vmem:[%s6016_s8 + $0x58] sm:$0xff] }
 0x80a   : > { %4596 = vmatpush1.bf16.msra.mxu1 %v4595_v47  ;;  %v4631_v47 = vpack.c.bf16 %v428_v44, %v427_v27  ;;  %v4115_v27 = vld [vmem:[%s6011_s3 + $0xb0] sm:$0xff] }
 0x80b   : > { %4598 = vmatprep.subr.bf16.mxu1 %v4597_v52 }
 0x80e   : > { %4600 = vmatpush1.bf16.msra.mxu1 %v4599_v55  ;;  %v2000_v55 = vsub.s32 3, %v5100_v29 }
 0x80f   : > { %4602 = vmatprep.subr.bf16.mxu1 %v4601_v58 }
 0x810   : > { %v2001_v59 = vrot.slane %v5346_v24, %v2000_v55 }
 0x812   : > { %4604 = vmatpush1.bf16.msra.mxu1 %v4603_v61 }
 0x813   : > { %4606 = vmatprep.subr.bf16.mxu1 %v4605_v1  ;;  %v448_v1 = vld [vmem:[%s6016_s8 + $0xf8] sm:$0xff] }
 0x816   : > { %4608 = vmatpush1.bf16.msra.mxu1 %v4607_v3  ;;  %v431_v3 = vld [vmem:[%s6016_s8 + $0x70] sm:$0xff] }
 0x817   : > { %v4639_v5 = vpack.c.bf16 %v432_v4, %v431_v3 }
 0x896   : > { %v1981_v37 = vpop.xlane.xlu1 %1980 }
 0x897   : > { %v1983_v38 = vmul.f32 0.015625, %v1981_v37  ;;  %v426_v37 = vld [vmem:[%s6016_s8 + $0x48] sm:$0xff] }
 0x899   : > { %v5352_v39 = vsub.f32 %v1978_v34, %v1983_v38  ;;  %v4625_v34 = vpack.c.bf16 %v442_v32, %v441_v31  ;;  %v443_v38 = vld [vmem:[%s6016_s8 + $0xd0] sm:$0xff]  ;;  %v4110_v31 = vld [vmem:[%s6011_s3 + $0x88] sm:$0xff]  ;;  %v4112_v32 = vld [vmem:[%s6011_s3 + $0x98] sm:$0xff] }
 0x89a   : > { %v4641_v33 = vpack.c.bf16 %v4112_v32, %v4110_v31 }
 0x89b   : > { %v1985_v41 = vmul.f32 %v5352_v39, %v5352_v39  ;;  %4626 = vmatprep.subr.bf16.mxu0 %v4625_v34  ;;  %v4109_v34 = vld [vmem:[%s6011_s3 + $0x80] sm:$0xff] }
 0x89c   : > { %4642 = vmatprep.subr.bf16.mxu1 %v4641_v33 }
 0x89d   : > { %v1986_v42 = vsel %vm461_vm0, %v1985_v41, 0.0  ;;  %v444_v41 = vld [vmem:[%s6016_s8 + $0xd8] sm:$0xff] }
 0x89e   : > { %1987 = vadd.xlane.f32.xlu0 %v1986_v42  ;;  %v4627_v42 = vpack.c.bf16 %v426_v37, %v425_v35  ;;  %v4629_v43 = vpack.c.bf16 %v444_v41, %v443_v38  ;;  %v4111_v35 = vld [vmem:[%s6011_s3 + $0x90] sm:$0xff]  ;;  %v4114_v38 = vld [vmem:[%s6011_s3 + $0xa8] sm:$0xff]  ;;  %v4116_v41 = vld [vmem:[%s6011_s3 + $0xb8] sm:$0xff] }
 0x89f   : > { %v4643_v37 = vpack.c.bf16 %v4111_v35, %v4109_v34 }
 0x8a0   : > { %4628 = vmatpush3.bf16.msra.mxu0 %v4627_v42  ;;  %v4645_v42 = vpack.c.bf16 %v4116_v41, %v4114_v38 }
 0x8a1   : > { %4630 = vmatprep.subr.bf16.mxu0 %v4629_v43  ;;  %v4113_v43 = vld [vmem:[%s6011_s3 + $0xa0] sm:$0xff] }
 0x8a2   : > { %v4647_v44 = vpack.c.bf16 %v4115_v27, %v4113_v43 }
 0x8a4   : > { %4632 = vmatpush3.bf16.msra.mxu0 %v4631_v47  ;;  %v4649_v47 = vpack.c.bf16 %v4120_v46, %v4118_v45 }
 0x8a5   : > { %4634 = vmatprep.subr.bf16.mxu0 %v4633_v49  ;;  %v4117_v49 = vld [vmem:[%s6011_s3 + $0xc0] sm:$0xff] }
 0x8a8   : > { %4636 = vmatpush3.bf16.msra.mxu0 %v4635_v0  ;;  %v2180_v0 = vsub.s32 4, %v5100_v29 }
 0x92b   : > { %v1988_v50 = vpop.xlane.xlu0 %1987 }
 0x92c   : > { %v1989_v52 = vmul.f32 0.015625, %v1988_v50  ;;  %v4119_v50 = vld [vmem:[%s6011_s3 + $0xd0] sm:$0xff] }
 0x92e   : > { %v1990_v53 = vadd.f32 1e-05, %v1989_v52  ;;  %v4651_v52 = vpack.c.bf16 %v4119_v50, %v4117_v49 }
 0x930   : > { %4807 = vrsqrt.f32 %v1990_v53  ;;  %v4122_v53 = vld [vmem:[%s6011_s3 + $0xe8] sm:$0xff] }
 0x93a   : > { %v4808_v57 = vpop.eup %4807 }
 0x93b   : > { %v1992_v58 = vmul.f32 %v4808_v57, %v5352_v39  ;;  %v447_v39 = vld [vmem:[%s6016_s8 + $0xf0] sm:$0xff]  ;;  %v4121_v57 = vld [vmem:[%s6011_s3 + $0xe0] sm:$0xff] }
 0x93c   : > { %v4637_v2 = vpack.c.bf16 %v448_v1, %v447_v39  ;;  %v2185_v39 = vsub.s32 5, %v5100_v29  ;;  %v2181_v1 = vrot.slane %v5346_v24, %v2180_v0 }
 0x93d   : > { %v1997_v60 = vmul.f32 %v1996_v56, %v1992_v58  ;;  %v4124_v56 = vld [vmem:[%s6011_s3 + $0xf8] sm:$0xff] }
 0x93e   : > { %4638 = vmatprep.subr.bf16.mxu0 %v4637_v2  ;;  %v4653_v58 = vpack.c.bf16 %v4124_v56, %v4122_v53  ;;  %v2186_v4 = vrot.slane %v5346_v24, %v2185_v39 }
 0x93f   : > { %v2002_v61 = vadd.f32 %v2001_v59, %v1997_v60  ;;  %4640 = vmatpush3.bf16.msra.mxu0 %v4639_v5  ;;  %v4123_v59 = vld [vmem:[%s6011_s3 + $0xf0] sm:$0xff] }
 0x940   : > { %4486 = vmatprep.subr.mxu0 %v4911_v7  ;;  %v4655_v60 = vpack.c.bf16 %v4123_v59, %v4121_v57 }
 0x941   : > { %4108 = vmatmul.mubr.msk.f32.vlgmr.msra.gmra.mrb[22].mxu1 %vm461_vm0, %v2002_v61 }
 0x942   : > { %2348 = vmatprep.mubr.f32.mxu1 %v4911_v7  ;;  %4644 = vmatpush1.bf16.msra.mxu1 %v4643_v37 }
 0x943   : > { %4646 = vmatprep.subr.bf16.mxu1 %v4645_v42 }
 0x946   : > { %4648 = vmatpush1.bf16.msra.mxu1 %v4647_v44 }
 0x947   : > { %4650 = vmatprep.subr.bf16.mxu1 %v4649_v47 }
 0x94a   : > { %4652 = vmatpush1.bf16.msra.mxu1 %v4651_v52 }
 0x94b   : > { %4654 = vmatprep.subr.bf16.mxu1 %v4653_v58 }
 0x94e   : > { %4656 = vmatpush1.bf16.msra.mxu1 %v4655_v60 }
 0x94f   : > { %4466 = vmatprep.subr.mxu1 %v4911_v7 }
 0xa14   : > { %v2083_v10 = vpop.f32.mrb[22].mxu1 }
 0xa15   : > { %v2084_v11 = vadd.f32 %v2083_v10, %v2007_v8  ;;  %v2085_v12 = vpop.f32.mrb[23].mxu1  ;;  %v4125_v8 = vld [vmem:[%s6012_s4 + $0x2] sm:$0x3] }
 0xa16   : > { %v2086_v13 = vadd.f32 %v2085_v12, %v2011_v9  ;;  %v2274_v9 = vrot.slane %v4125_v8, %v5107_v30  ;;  %v2278_v24 = vrot.slane %v4125_v8, %v5130_v36 }
 0xa17   : > { %v2088_v15 = vmax.f32 %v2084_v11, 0.0 }
 0xa18   : > { %v2089_v14 = vmax.f32 %v2086_v13, 0.0 }
 0xa1a   : > { %2158 = vmatprep.mubr.f32.mxu0 %v2089_v14 }
 0xa1b   : > { %2159 = vmatmul.mubr.f32.vlgmr.msra.gmra.mrb[14].mxu0 %v2088_v15 }
 0xa1c   : > { %4488 = vmatprep.mubr.msk.f32.mxu0 %vm4912_vm1, %v4911_v7 }
 0xaee   : > { %v4288_v16 = vpop.f32.mrb[14].mxu0 }
 0xaef   : > { %v4289_v18 = vpop.f32.mrb[15].mxu0 }
 0xaf0   : > { %v4290_v19 = vadd.f32 %v4289_v18, %v4288_v16 }
 0xaf2   : > { %v2161_v20 = vadd.f32 %v4290_v19, %v2093_v17 }
 0xaf4   : > { %v2164_v21 = vadd.f32 %v2161_v20, %v2002_v61 }
 0xaf6   : > { %v2165_v22 = vsel %vm461_vm0, %v2164_v21, 0.0 }
 0xaf7   : > { %2166 = vadd.xlane.f32.xlu0 %v2165_v22 }
 0xb84   : > { %v2167_v23 = vpop.xlane.xlu0 %2166 }
 0xb85   : > { %v2168_v25 = vmul.f32 0.015625, %v2167_v23 }
 0xb87   : > { %v2169_v26 = vsub.f32 %v2164_v21, %v2168_v25 }
 0xb89   : > { %v2170_v28 = vmul.f32 %v2169_v26, %v2169_v26 }
 0xb8b   : > { %v2171_v40 = vsel %vm461_vm0, %v2170_v28, 0.0 }
 0xb8c   : > { %2172 = vadd.xlane.f32.xlu1 %v2171_v40 }
 0xc19   : > { %v2173_v61 = vpop.xlane.xlu1 %2172 }
 0xc1a   : > { %v2174_v62 = vmul.f32 0.015625, %v2173_v61 }
 0xc1c   : > { %v2175_v63 = vadd.f32 1e-05, %v2174_v62 }
 0xc1e   : > { %4809 = vrsqrt.f32 %v2175_v63 }
 0xc28   : > { %v4810_v2 = vpop.eup %4809 }
 0xc29   : > { %v2177_v3 = vmul.f32 %v4810_v2, %v2169_v26 }
 0xc2b   : > { %v2182_v5 = vmul.f32 %v2181_v1, %v2177_v3 }
 0xc2d   : > { %v5581_v6 = vadd.f32 %v2186_v4, %v2182_v5 }
 0xc2f   : > { %4184 = vmatmul.mubr.msk.f32.vlgmr.msra.gmra.mrb[24].mxu1 %vm461_vm0, %v5581_v6 }
 0xc30   : > { %4468 = vmatprep.mubr.msk.f32.mxu1 %vm4912_vm1, %v4911_v7 }
 0xd02   : > { %v2350_v10 = vpop.f32.mrb[24].mxu1 }
 0xd03   : > { %v2351_v11 = vadd.f32 %v2350_v10, %v2274_v9  ;;  %v2352_v12 = vpop.f32.mrb[25].mxu1 }
 0xd04   : > { %v5602_v14 = vadd.f32 %v2352_v12, %v2278_v24 }
 0xd05   : > { %2356 = vrot.lane.b32.xlu0 %v2351_v11, %s6061_s26 }
 0xd09   : > { %2516 = vrot.lane.b32.xlu0 %v2351_v11, %s6062_s27 }
 0xd0d   : > { %2684 = vrot.lane.b32.xlu0 %v2351_v11, %s6059_s11 }
 0xd11   : > { %2849 = vrot.lane.b32.xlu0 %v2351_v11, %s6058_s12 }
 0xd15   : > { %3014 = vrot.lane.b32.xlu0 %v2351_v11, %s6057_s21 }
 0xd19   : > { %3179 = vrot.lane.b32.xlu0 %v2351_v11, %s6063_s29 }
 0xd1d   : > { %3344 = vrot.lane.b32.xlu0 %v2351_v11, %s6064_s0 }
 0xd21   : > { %3509 = vrot.lane.b32.xlu0 %v2351_v11, %s6065_s20 }
 0xd77   : > { %v2357_v13 = vpop.permute.xlu0 %2356 }
 0xd78   : > { %4467 = vmatpush3.xpose.msk.msra.mxu1 %vm545_vm2, %v2357_v13 }
 0xd79   : > { %4471 = vmatprep.subr.mxu1 %v4911_v7 }
 0xd7b   : > { %4469 = vmatmul.mubr.msk.f32.vlgmr.msra.gmra.mrb[26].mxu1 %vm545_vm2, %v2351_v11  ;;  %v2517_v15 = vpop.permute.xlu0 %2516 }
 0xd7c   : > { %4472 = vmatpush3.msra.mxu1 %v5602_v14  ;;  %4473 = vmatprep.mubr.msk.f32.mxu1 %vm4912_vm1, %v4911_v7 }
 0xd7d   : > { %4476 = vmatprep.subr.mxu1 %v4911_v7 }
 0xd7f   : > { %v2685_v16 = vpop.permute.xlu0 %2684 }
 0xd80   : > { %4487 = vmatpush3.xpose.msk.msra.mxu0 %vm545_vm2, %v2685_v16 }
 0xd81   : > { %4496 = vmatprep.subr.mxu0 %v4911_v7 }
 0xd83   : > { %v2850_v40 = vpop.permute.xlu0 %2849 }
 0xd87   : > { %v3015_v32 = vpop.permute.xlu0 %3014 }
 0xd8b   : > { %v3180_v35 = vpop.permute.xlu0 %3179 }
 0xd8f   : > { %v3345_v42 = vpop.permute.xlu0 %3344 }
 0xd93   : > { %v3510_v44 = vpop.permute.xlu0 %3509 }
 0xe4e   : > { %v2428_v17 = vpop.f32.mrb[26].mxu1 }
 0xe4f   : > { %v2429_v18 = vadd.f32 %v2428_v17, %v5159_v48  ;;  %v4470_v19 = vpop.f32.mrb[27].mxu1 }
 0xe51   : > { %v2432_v20 = vsel %vm545_vm2, %v2429_v18, -inf }
 0xe52   : > { %2433 = vmax.xlane.f32.xlu1 %v2432_v20 }
 0xe63   : > { %2518 = vrot.lane.b32.xlu1 %v2351_v11, %s6060_s18 }
 0xedf   : > { %v2434_v21 = vpop.xlane.xlu1 %2433 }
 0xee0   : > { %v2435_v22 = vsub.f32 %v2429_v18, %v2434_v21 }
 0xee2   : > { %v2436_v23 = vmul.f32 1.442695, %v2435_v22 }
 0xee3   : > { %v2519_v28 = vpop.permute.xlu1 %2518 }
 0xee4   : > { %4811 = vpow2.f32 %v2436_v23 }
 0xeee   : > { %v4812_v25 = vpop.eup %4811 }
 0xeef   : > { %v2438_v26 = vsel %vm545_vm2, %v4812_v25, 0.0 }
 0xef0   : > { %2439 = vadd.xlane.f32.xlu1 %v2438_v26 }
 0xf01   : > { %2682 = vrot.lane.b32.xlu1 %v2351_v11, %s6066_s1 }
 0xf05   : > { %2847 = vrot.lane.b32.xlu1 %v2351_v11, %s6067_s2 }
 0xf09   : > { %3012 = vrot.lane.b32.xlu1 %v2351_v11, %s6068_s28 }
 0xf0d   : > { %3177 = vrot.lane.b32.xlu1 %v2351_v11, %s6069_s22 }
 0xf11   : > { %3342 = vrot.lane.b32.xlu1 %v2351_v11, %s6070_s30 }
 0xf15   : > { %3507 = vrot.lane.b32.xlu1 %v2351_v11, %s6071_s25 }
 0xf7d   : > { %v2440_v31 = vpop.xlane.xlu1 %2439 }
 0xf7e   : > { %4813 = vrcp.f32 %v2440_v31 }
 0xf81   : > { %v2683_v33 = vpop.permute.xlu1 %2682 }
 0xf82   : > { %4489 = vmatmul.mubr.msk.f32.vlgmr.msra.gmra.mrb[16].mxu0 %vm545_vm2, %v2683_v33 }
 0xf83   : > { %4497 = vmatpush3.xpose.msk.msra.mxu0 %vm545_vm2, %v2850_v40  ;;  %4498 = vmatprep.mubr.msk.f32.mxu0 %vm4912_vm1, %v4911_v7 }
 0xf84   : > { %4506 = vmatprep.subr.mxu0 %v4911_v7 }
 0xf85   : > { %v2848_v34 = vpop.permute.xlu1 %2847 }
 0xf86   : > { %4499 = vmatmul.mubr.msk.f32.vlgmr.msra.gmra.mrb[18].mxu0 %vm545_vm2, %v2848_v34 }
 0xf87   : > { %4507 = vmatpush3.xpose.msk.msra.mxu0 %vm545_vm2, %v3015_v32  ;;  %4508 = vmatprep.mubr.msk.f32.mxu0 %vm4912_vm1, %v4911_v7 }
 0xf88   : > { %v4814_v37 = vpop.eup %4813  ;;  %4516 = vmatprep.subr.mxu0 %v4911_v7 }
 0xf89   : > { %v2442_v38 = vmul.f32 %v4814_v37, %v4812_v25  ;;  %v3013_v41 = vpop.permute.xlu1 %3012 }
 0xf8a   : > { %4509 = vmatmul.mubr.msk.f32.vlgmr.msra.gmra.mrb[20].mxu0 %vm545_vm2, %v3013_v41 }
 0xf8b   : > { %4517 = vmatpush3.xpose.msk.msra.mxu0 %vm545_vm2, %v3180_v35  ;;  %4474 = vmatmul.mubr.msk.f32.vlgmr.msra.gmra.mrb[28].mxu1 %vm545_vm2, %v2442_v38 }
 0xf8c   : > { %4477 = vmatpush3.xpose.msk.msra.mxu1 %vm545_vm2, %v2519_v28  ;;  %4518 = vmatprep.mubr.msk.f32.mxu0 %vm4912_vm1, %v4911_v7 }
 0xf8d   : > { %v3178_v43 = vpop.permute.xlu1 %3177  ;;  %4526 = vmatprep.subr.mxu0 %v4911_v7  ;;  %4478 = vmatprep.mubr.msk.f32.mxu1 %vm4912_vm1, %v4911_v7 }
 0xf8e   : > { %4519 = vmatmul.mubr.msk.f32.vlgmr.msra.gmra.mrb[22].mxu0 %vm545_vm2, %v3178_v43  ;;  %4481 = vmatprep.subr.mxu1 %v4911_v7 }
 0xf8f   : > { %4527 = vmatpush3.xpose.msk.msra.mxu0 %vm545_vm2, %v3345_v42  ;;  %4479 = vmatmul.mubr.msk.f32.vlgmr.msra.gmra.mrb[30].mxu1 %vm545_vm2, %v2517_v15 }
 0xf90   : > { %4528 = vmatprep.mubr.msk.f32.mxu0 %vm4912_vm1, %v4911_v7  ;;  %4536 = vmatprep.subr.mxu0 %v4911_v7 }
 0xf91   : > { %v3343_v27 = vpop.permute.xlu1 %3342  ;;  %4483 = vmatprep.mubr.msk.f32.mxu1 %vm4912_vm1, %v4911_v7 }
 0xf92   : > { %4529 = vmatmul.mubr.msk.f32.vlgmr.msra.gmra.mrb[24].mxu0 %vm545_vm2, %v3343_v27 }
 0xf93   : > { %4537 = vmatpush3.xpose.msk.msra.mxu0 %vm545_vm2, %v3510_v44  ;;  %4538 = vmatprep.mubr.msk.f32.mxu0 %vm4912_vm1, %v4911_v7 }
 0xf94   : > { %4657 = vmatprep.subr.bf16.mxu0 %v4929_v51 }
 0xf95   : > { %v3508_v45 = vpop.permute.xlu1 %3507 }
 0xf96   : > { %4539 = vmatmul.mubr.msk.f32.vlgmr.msra.gmra.mrb[26].mxu0 %vm545_vm2, %v3508_v45 }
 0xf97   : > { %4562 = vmatprep.mubr.msk.f32.mxu0 %vm4912_vm1, %v4911_v7 }
0x1055   : > { %v2756_v46 = vpop.f32.mrb[16].mxu0 }
0x1056   : > { %v2757_v47 = vadd.f32 %v2756_v46, %v5159_v48  ;;  %v4490_v49 = vpop.f32.mrb[17].mxu0 }
0x1058   : > { %v2760_v50 = vsel %vm545_vm2, %v2757_v47, -inf }
0x1059   : > { %2761 = vmax.xlane.f32.xlu1 %v2760_v50  ;;  %v2921_v52 = vpop.f32.mrb[18].mxu0 }
0x105a   : > { %v4500_v53 = vpop.f32.mrb[19].mxu0  ;;  %v2922_v4 = vadd.f32 %v2921_v52, %v5159_v48 }
0x105c   : > { %v2925_v12 = vsel %vm545_vm2, %v2922_v4, -inf }
0x105d   : > { %v3086_v56 = vpop.f32.mrb[20].mxu0 }
0x105e   : > { %v5659_v57 = vpop.f32.mrb[28].mxu1  ;;  %v4510_v58 = vpop.f32.mrb[21].mxu0  ;;  %v3087_v10 = vadd.f32 %v3086_v56, %v5159_v48 }
0x105f   : > { %v4475_v59 = vpop.f32.mrb[29].mxu1 }
0x1060   : > { %v3090_v17 = vsel %vm545_vm2, %v3087_v10, -inf }
0x1061   : > { %v3251_v60 = vpop.f32.mrb[22].mxu0 }
0x1062   : > { %v3252_v61 = vadd.f32 %v3251_v60, %v5159_v48  ;;  %v2590_v62 = vpop.f32.mrb[30].mxu1  ;;  %v4520_v63 = vpop.f32.mrb[23].mxu0 }
0x1063   : > { %v2591_v1 = vadd.f32 %v2590_v62, %v5159_v48  ;;  %v4480_v2 = vpop.f32.mrb[31].mxu1 }
0x1064   : > { %v3255_v3 = vsel %vm545_vm2, %v3252_v61, -inf }
0x1065   : > { %3256 = vmax.xlane.f32.xlu1 %v3255_v3  ;;  %v3416_v5 = vpop.f32.mrb[24].mxu0  ;;  %v2594_v8 = vsel %vm545_vm2, %v2591_v1, -inf }
0x1066   : > { %2595 = vmax.xlane.f32.xlu0 %v2594_v8  ;;  %v4530_v9 = vpop.f32.mrb[25].mxu0  ;;  %v3417_v16 = vadd.f32 %v3416_v5, %v5159_v48 }
0x1068   : > { %v3420_v18 = vsel %vm545_vm2, %v3417_v16, -inf }
0x1069   : > { %v3581_v11 = vpop.f32.mrb[26].mxu0 }
0x106a   : > { %v3582_v24 = vadd.f32 %v3581_v11, %v5159_v48  ;;  %2926 = vmax.xlane.f32.xlu0 %v2925_v12  ;;  %v4540_v13 = vpop.f32.mrb[27].mxu0 }
0x106c   : > { %v3585_v15 = vsel %vm545_vm2, %v3582_v24, -inf }
0x106d   : > { %3586 = vmax.xlane.f32.xlu1 %v3585_v15 }
0x106e   : > { %3091 = vmax.xlane.f32.xlu0 %v3090_v17 }
0x1072   : > { %3421 = vmax.xlane.f32.xlu0 %v3420_v18 }
0x10e6   : > { %v2762_v19 = vpop.xlane.xlu1 %2761 }
0x10e7   : > { %v2763_v20 = vsub.f32 %v2757_v47, %v2762_v19 }
0x10e9   : > { %v2764_v21 = vmul.f32 1.442695, %v2763_v20 }
0x10eb   : > { %4815 = vpow2.f32 %v2764_v21 }
0x10f2   : > { %v3257_v22 = vpop.xlane.xlu1 %3256 }
0x10f3   : > { %v2596_v23 = vpop.xlane.xlu0 %2595  ;;  %v3258_v26 = vsub.f32 %v3252_v61, %v3257_v22 }
0x10f4   : > { %v2597_v38 = vsub.f32 %v2591_v1, %v2596_v23 }
0x10f5   : > { %v5673_v25 = vpop.eup %4815  ;;  %v3259_v31 = vmul.f32 1.442695, %v3258_v26 }
0x10f6   : > { %v2766_v28 = vsel %vm545_vm2, %v5673_v25, 0.0  ;;  %v2598_v44 = vmul.f32 1.442695, %v2597_v38 }
0x10f7   : > { %2767 = vadd.xlane.f32.xlu1 %v2766_v28  ;;  %v2927_v48 = vpop.xlane.xlu0 %2926 }
0x10f8   : > { %v2928_v40 = vsub.f32 %v2922_v4, %v2927_v48 }
0x10fa   : > { %v2929_v32 = vmul.f32 1.442695, %v2928_v40  ;;  %v3587_v33 = vpop.xlane.xlu1 %3586 }
0x10fb   : > { %v3588_v34 = vsub.f32 %v3582_v24, %v3587_v33  ;;  %v3092_v35 = vpop.xlane.xlu0 %3091 }
0x10fc   : > { %4817 = vpow2.f32 %v2929_v32  ;;  %v3093_v37 = vsub.f32 %v3087_v10, %v3092_v35  ;;  %v4127_v32 = vld [vmem:[%s6013_s5 + $0x48] sm:$0xff]  ;;  %v4128_v35 = vld [vmem:[%s6013_s5 + $0x50] sm:$0xff] }
0x10fd   : > { %4819 = vpow2.f32 %v3259_v31  ;;  %v3589_v41 = vmul.f32 1.442695, %v3588_v34  ;;  %v4126_v31 = vld [vmem:[%s6013_s5 + $0x40] sm:$0xff] }
0x10fe   : > { %v3094_v42 = vmul.f32 1.442695, %v3093_v37  ;;  %v4658_v33 = vpack.c.bf16 %v4127_v32, %v4126_v31  ;;  %v4139_v32 = vld [vmem:[%s6014_s6 + $0xa8] sm:$0xff] }
0x10ff   : > { %v3422_v43 = vpop.xlane.xlu0 %3421 }
0x1100   : > { %4821 = vpow2.f32 %v3094_v42  ;;  %v3423_v27 = vsub.f32 %v3417_v16, %v3422_v43  ;;  %4659 = vmatpush3.bf16.msra.mxu0 %v4658_v33  ;;  %v4130_v42 = vld [vmem:[%s6013_s5 + $0x60] sm:$0xff]  ;;  %v4131_v43 = vld [vmem:[%s6013_s5 + $0x68] sm:$0xff]  ;;  %v4141_v33 = vld [vmem:[%s6014_s6 + $0xb8] sm:$0xff] }
0x1101   : > { %4823 = vpow2.f32 %v3589_v41  ;;  %4660 = vmatprep.subr.bf16.mxu0 %v4929_v51 }
0x1102   : > { %v3424_v45 = vmul.f32 1.442695, %v3423_v27 }
0x1104   : > { %4825 = vpow2.f32 %v3424_v45 }
0x1105   : > { %4827 = vpow2.f32 %v2598_v44  ;;  %v4664_v44 = vpack.c.bf16 %v4131_v43, %v4130_v42  ;;  %v4142_v43 = vld [vmem:[%s6014_s6 + $0xc0] sm:$0xff] }
0x1106   : > { %v4818_v46 = vpop.eup %4817 }
0x1107   : > { %v2931_v47 = vsel %vm545_vm2, %v4818_v46, 0.0  ;;  %v5678_v49 = vpop.eup %4819 }
0x1108   : > { %2932 = vadd.xlane.f32.xlu0 %v2931_v47  ;;  %v3261_v52 = vsel %vm545_vm2, %v5678_v49, 0.0  ;;  %v4133_v47 = vld [vmem:[%s6013_s5 + $0x78] sm:$0xff] }
0x110a   : > { %v4822_v50 = vpop.eup %4821 }
0x110b   : > { %v3096_v53 = vsel %vm545_vm2, %v4822_v50, 0.0  ;;  %v5683_v56 = vpop.eup %4823 }
0x110c   : > { %3262 = vadd.xlane.f32.xlu0 %v3261_v52  ;;  %3097 = vadd.xlane.f32.xlu1 %v3096_v53  ;;  %v3591_v59 = vsel %vm545_vm2, %v5683_v56, 0.0 }
0x110e   : > { %v5685_v58 = vpop.eup %4825 }
0x110f   : > { %v3426_v60 = vsel %vm545_vm2, %v5685_v58, 0.0  ;;  %v4828_v61 = vpop.eup %4827 }
0x1110   : > { %3592 = vadd.xlane.f32.xlu0 %v3591_v59  ;;  %3427 = vadd.xlane.f32.xlu1 %v3426_v60  ;;  %v2600_v62 = vsel %vm545_vm2, %v4828_v61, 0.0 }
0x1114   : > { %2601 = vadd.xlane.f32.xlu0 %v2600_v62 }
0x1121   : > { %2606 = vrot.lane.b32.xlu1 %v5602_v14, %s6062_s27 }
0x1125   : > { %2936 = vrot.lane.b32.xlu1 %v5602_v14, %s6067_s2  ;;  %s359_s2 = sand.u32 1, %s4901_s14  }
0x1129   : > { %3101 = vrot.lane.b32.xlu1 %v5602_v14, %s6068_s28  ;;  %s4212_s28 = sshll.u32 %s5007_s17, 7  ;;  %s4930_s17 = smov [#allocation2]  }
0x112a   : > { %2771 = vrot.lane.b32.xlu0 %v5602_v14, %s6066_s1 }
0x112d   : > { %3431 = vrot.lane.b32.xlu1 %v5602_v14, %s6070_s30 }
0x112e   : > { %3266 = vrot.lane.b32.xlu0 %v5602_v14, %s6069_s22 }
0x1132   : > { %3596 = vrot.lane.b32.xlu0 %v5602_v14, %s6071_s25 }
0x1184   : > { %v2768_v63 = vpop.xlane.xlu1 %2767 }
0x1195   : > { %v2933_v1 = vpop.xlane.xlu0 %2932 }
0x1199   : > { %v3098_v2 = vpop.xlane.xlu1 %3097  ;;  %v3263_v3 = vpop.xlane.xlu0 %3262 }
0x119d   : > { %v3428_v4 = vpop.xlane.xlu1 %3427  ;;  %v3593_v5 = vpop.xlane.xlu0 %3592 }
0x11a1   : > { %v2607_v8 = vpop.permute.xlu1 %2606  ;;  %v2602_v9 = vpop.xlane.xlu0 %2601 }
0x11a2   : > { %4829 = vrcp.f32 %v2602_v9  ;;  %4482 = vmatpush3.msra.mxu1 %v2607_v8 }
0x11a3   : > { %4491 = vmatprep.subr.mxu1 %v4911_v7  ;;  %4831 = vrcp.f32 %v2768_v63 }
0x11a4   : > { %4833 = vrcp.f32 %v2933_v1 }
0x11a5   : > { %4835 = vrcp.f32 %v3098_v2  ;;  %v2772_v24 = vpop.permute.xlu0 %2771  ;;  %v2937_v13 = vpop.permute.xlu1 %2936 }
0x11a6   : > { %4837 = vrcp.f32 %v3263_v3 }
0x11a7   : > { %4839 = vrcp.f32 %v3428_v4 }
0x11a8   : > { %4841 = vrcp.f32 %v3593_v5 }
0x11a9   : > { %v3102_v18 = vpop.permute.xlu1 %3101  ;;  %v3267_v21 = vpop.permute.xlu0 %3266 }
0x11ac   : > { %v4830_v10 = vpop.eup %4829 }
0x11ad   : > { %v2604_v11 = vmul.f32 %v4830_v10, %v4828_v61  ;;  %v4832_v12 = vpop.eup %4831  ;;  %v3597_v48 = vpop.permute.xlu0 %3596 }
0x11ae   : > { %v2770_v14 = vmul.f32 %v4832_v12, %v5673_v25  ;;  %v4834_v15 = vpop.eup %4833  ;;  %v3432_v25 = vpop.permute.xlu1 %3431 }
0x11af   : > { %4484 = vmatmul.mubr.msk.f32.vlgmr.msra.gmra.mrb[32].mxu1 %vm545_vm2, %v2604_v11  ;;  %v2935_v16 = vmul.f32 %v4834_v15, %v4818_v46  ;;  %v4836_v17 = vpop.eup %4835  ;;  %v4132_v46 = vld [vmem:[%s6013_s5 + $0x70] sm:$0xff] }
0x11b0   : > { %4492 = vmatpush3.msra.mxu1 %v2772_v24  ;;  %4493 = vmatprep.mubr.msk.f32.mxu1 %vm4912_vm1, %v4911_v7  ;;  %v3100_v19 = vmul.f32 %v4836_v17, %v4822_v50  ;;  %v4838_v20 = vpop.eup %4837  ;;  %v4667_v50 = vpack.c.bf16 %v4133_v47, %v4132_v46  ;;  %v4149_v46 = vld [vmem:[%s6014_s6 + $0xf8] sm:$0xff] }
0x11b1   : > { %4501 = vmatprep.subr.mxu1 %v4911_v7  ;;  %v3265_v22 = vmul.f32 %v4838_v20, %v5678_v49  ;;  %v4840_v23 = vpop.eup %4839 }
0x11b2   : > { %v3430_v26 = vmul.f32 %v4840_v23, %v5685_v58  ;;  %v4842_v28 = vpop.eup %4841 }
0x11b3   : > { %4494 = vmatmul.mubr.msk.f32.vlgmr.msra.gmra.mrb[34].mxu1 %vm545_vm2, %v2770_v14  ;;  %v3595_v40 = vmul.f32 %v4842_v28, %v5683_v56 }
0x11b4   : > { %4502 = vmatpush3.msra.mxu1 %v2937_v13  ;;  %4503 = vmatprep.mubr.msk.f32.mxu1 %vm4912_vm1, %v4911_v7 }
0x11b5   : > { %4511 = vmatprep.subr.mxu1 %v4911_v7 }
0x11b7   : > { %4504 = vmatmul.mubr.msk.f32.vlgmr.msra.gmra.mrb[36].mxu1 %vm545_vm2, %v2935_v16 }
0x11b8   : > { %4512 = vmatpush3.msra.mxu1 %v3102_v18  ;;  %4513 = vmatprep.mubr.msk.f32.mxu1 %vm4912_vm1, %v4911_v7 }
0x11b9   : > { %4521 = vmatprep.subr.mxu1 %v4911_v7 }
0x11bb   : > { %4514 = vmatmul.mubr.msk.f32.vlgmr.msra.gmra.mrb[38].mxu1 %vm545_vm2, %v3100_v19 }
0x11bc   : > { %4522 = vmatpush3.msra.mxu1 %v3267_v21  ;;  %4523 = vmatprep.mubr.msk.f32.mxu1 %vm4912_vm1, %v4911_v7 }
0x11bd   : > { %4531 = vmatprep.subr.mxu1 %v4911_v7 }
0x11bf   : > { %4524 = vmatmul.mubr.msk.f32.vlgmr.msra.gmra.mrb[40].mxu1 %vm545_vm2, %v3265_v22 }
0x11c0   : > { %4532 = vmatpush3.msra.mxu1 %v3432_v25  ;;  %4533 = vmatprep.mubr.msk.f32.mxu1 %vm4912_vm1, %v4911_v7 }
0x11c1   : > { %4541 = vmatprep.subr.mxu1 %v4911_v7 }
0x11c3   : > { %4534 = vmatmul.mubr.msk.f32.vlgmr.msra.gmra.mrb[42].mxu1 %vm545_vm2, %v3430_v26  ;;  %v4135_v26 = vld [vmem:[%s6014_s6 + $0x88] sm:$0xff] }
0x11c4   : > { %4542 = vmatpush3.msra.mxu1 %v3597_v48  ;;  %4543 = vmatprep.mubr.msk.f32.mxu1 %vm4912_vm1, %v4911_v7  ;;  %v4134_v48 = vld [vmem:[%s6014_s6 + $0x80] sm:$0xff] }
0x11c7   : > { %4544 = vmatmul.mubr.msk.f32.vlgmr.msra.gmra.mrb[44].mxu1 %vm545_vm2, %v3595_v40  ;;  %v4136_v40 = vld [vmem:[%s6014_s6 + $0x90] sm:$0xff] }
0x11c8   : > { %3886 = vmatprep.mubr.f32.mxu1 %v4911_v7  ;;  %v4129_v7 = vld [vmem:[%s6013_s5 + $0x58] sm:$0xff]  ;;  %v4671_v31 = vpack.c.bf16 %v4136_v40, %v4134_v48  ;;  %v4179_v40 = vld [vmem:[%s6016_s8 + $0x1e0] sm:$0xff] }
0x11c9   : > { %v4661_v38 = vpack.c.bf16 %v4129_v7, %v4128_v35  ;;  %v4138_v35 = vld [vmem:[%s6014_s6 + $0xa0] sm:$0xff]  ;;  %v4140_v7 = vld [vmem:[%s6014_s6 + $0xb0] sm:$0xff]  ;;  %v4162_v48 = vld [vmem:[%s6016_s8 + $0x158] sm:$0xff] }
0x11cb   : > { %4662 = vmatpush3.bf16.msra.mxu0 %v4661_v38  ;;  %v4143_v38 = vld [vmem:[%s6014_s6 + $0xc8] sm:$0xff] }
0x11cc   : > { %4663 = vmatprep.subr.bf16.mxu0 %v4929_v51 }
0x11cf   : > { %4665 = vmatpush3.bf16.msra.mxu0 %v4664_v44 }
0x11d0   : > { %4666 = vmatprep.subr.bf16.mxu0 %v4929_v51 }
0x11d3   : > { %4668 = vmatpush3.bf16.msra.mxu0 %v4667_v50  ;;  %v4148_v50 = vld [vmem:[%s6014_s6 + $0xf0] sm:$0xff] }
0x1282   : > { %v2678_v34 = vpop.f32.mrb[32].mxu1 }
0x1283   : > { %3673 = vrot.lane.b32.xlu1 %v2678_v34, %s6065_s20  ;;  %v4485_v37 = vpop.f32.mrb[33].mxu1  ;;  %v4673_v34 = vpack.c.bf16 %v4141_v33, %v4139_v32  ;;  %s4080_s20 = sshll.u32 %s359_s2, 3 }
0x1284   : > { %v4675_v37 = vpack.c.bf16 %v4140_v7, %v4138_v35  ;;  %s361_s22 = scalar_lea.vmem [#allocation2], %s4080_s20 }
0x1285   : > { %s4008_s30 = sshll.u32 %s361_s22, 4  ;;  %s5967_s30 = int_to_ptr.vmem [resolvable:$true] %s4008_s30 }
0x1286   : > { %v2843_v41 = vpop.f32.mrb[34].mxu1 }
0x1287   : > { %3677 = vrot.lane.b32.xlu0 %v2843_v41, %s6064_s0  ;;  %v4495_v27 = vpop.f32.mrb[35].mxu1  ;;  %v4145_v41 = vld [vmem:[%s6014_s6 + $0xd8] sm:$0xff]  ;;  %s4851_s0 = sshll.u32 %s4930_s17, 4  ;;  %s4852_s0 = int_to_ptr.vmem [resolvable:$false] %s4851_s0 }
0x1288   : > { %v4677_v42 = vpack.c.bf16 %v4145_v41, %v4143_v38  ;;  %v4144_v27 = vld [vmem:[%s6014_s6 + $0xd0] sm:$0xff]  ;;  %s4853_s25 = scalar_lea.vmem %s4852_s0, 256  ;;  %p4854_p0 = scmp.lt.s32.totalorder %s5967_s30, %s4852_s0 }
0x1289   : > { %v4679_v44 = vpack.c.bf16 %v4144_v27, %v4142_v43 }
0x128a   : > { %v3008_v45 = vpop.f32.mrb[36].mxu1 }
0x128b   : > { %3681 = vrot.lane.b32.xlu1 %v3008_v45, %s6063_s29  ;;  %v4505_v49 = vpop.f32.mrb[37].mxu1  ;;  %v4147_v45 = vld [vmem:[%s6014_s6 + $0xe8] sm:$0xff]  ;;  %s4847_s29 = scalar_lea.vmem %s5967_s30, 128 }
0x128c   : > { %v4681_v47 = vpack.c.bf16 %v4149_v46, %v4147_v45  ;;  %v4146_v49 = vld [vmem:[%s6014_s6 + $0xe0] sm:$0xff]  ;;  %v4164_v45 = vld [vmem:[%s6016_s8 + $0x168] sm:$0xff]  ;;  %p4848_p11 = scmp.ne.s32.totalorder %s5967_s30, %s4847_s29  ;;  %p4855_p1 = scmp.lt.s32.totalorder %s4853_s25, %s4847_s29 }
0x128e   : > { %v3173_v52 = vpop.f32.mrb[38].mxu1  ;;  %p4849_p12 = pnand %p4848_p11, %p5024_p5  ;;  %p4856_p2 = por %p4855_p1, %p4854_p0 }
0x128f   : > { %3685 = vrot.lane.b32.xlu0 %v3173_v52, %s6057_s21  ;;  %v4515_v53 = vpop.f32.mrb[39].mxu1  ;;  %v4683_v52 = vpack.c.bf16 %v4148_v50, %v4146_v49  ;;  %v4166_v49 = vld [vmem:[%s6016_s8 + $0x178] sm:$0xff] }
0x1290   : > { %v4167_v53 = vld [vmem:[%s6016_s8 + $0x180] sm:$0xff]  ;;  %p4850_p13 = pneg %p4849_p12 }
0x1292   : > { %v3338_v56 = vpop.f32.mrb[40].mxu1  ;;  %p4857_p3 = pnand %p4856_p2, %p4850_p13 }
0x1293   : > { %3689 = vrot.lane.b32.xlu1 %v3338_v56, %s6058_s12  ;;  %v4525_v51 = vpop.f32.mrb[41].mxu1  ;;  %v4168_v56 = vld [vmem:[%s6016_s8 + $0x188] sm:$0xff] }
0x1294   : > { %v4151_v51 = vld [vmem:[%s6016_s8 + $0x100] sm:$0xff] }
0x1296   : > { %v3503_v58 = vpop.f32.mrb[42].mxu1 }
0x1297   : > { %3693 = vrot.lane.b32.xlu0 %v3503_v58, %s6059_s11  ;;  %v4535_v59 = vpop.f32.mrb[43].mxu1  ;;  %v4685_v58 = vpack.c.bf16 %v4168_v56, %v4167_v53  ;;  %s5965_s11 = scalar_lea.hbm %s6018_s10, %s4212_s28 }
0x1298   : > { %v4152_v59 = vld [vmem:[%s6016_s8 + $0x108] sm:$0xff] }
0x1299   : > { %4686 = vmatprep.subr.bf16.mxu0 %v4685_v58 }
0x129a   : > { %v3668_v60 = vpop.f32.mrb[44].mxu1 }
0x129b   : > { %3697 = vrot.lane.b32.xlu1 %v3668_v60, %s6060_s18  ;;  %v4545_v61 = vpop.f32.mrb[45].mxu1  ;;  %v4169_v60 = vld [vmem:[%s6016_s8 + $0x190] sm:$0xff]  ;;  %s3995_s18 = scalar_lea.sflag [#allocation3], %s359_s2 }
0x129c   : > { %v4170_v61 = vld [vmem:[%s6016_s8 + $0x198] sm:$0xff] }
0x12f5   : > { %v3674_v62 = vpop.permute.xlu1 %3673 }
0x12f6   : > { %v3700_v3 = vsel %vm545_vm2, %v5659_v57, %v3674_v62  ;;  %v5782_v57 = vld [vmem:[%s6017_s9 + $0x8] sm:$0x3f]  ;;  %v4687_v62 = vpack.c.bf16 %v4152_v59, %v4151_v51 }
0x12f7   : > { %v3710_v13 = vrot.slane %v5782_v57, %v5107_v30 }
0x12f9   : > { %v3678_v63 = vpop.permute.xlu0 %3677 }
0x12fa   : > { %v3701_v4 = vsel %vm1889_vm4, %v3700_v3, %v3678_v63  ;;  %v4689_v63 = vpack.c.bf16 %v4170_v61, %v4169_v60  ;;  %v4171_v3 = vld [vmem:[%s6016_s8 + $0x1a0] sm:$0xff] }
0x12fd   : > { %v3682_v1 = vpop.permute.xlu1 %3681 }
0x12fe   : > { %v3702_v8 = vsel %vm1891_vm5, %v3701_v4, %v3682_v1  ;;  %v4153_v1 = vld [vmem:[%s6016_s8 + $0x110] sm:$0xff]  ;;  %v4172_v4 = vld [vmem:[%s6016_s8 + $0x1a8] sm:$0xff] }
0x1301   : > { %v3686_v2 = vpop.permute.xlu0 %3685 }
0x1302   : > { %v3703_v10 = vsel %vm1893_vm6, %v3702_v8, %v3686_v2  ;;  %v4154_v2 = vld [vmem:[%s6016_s8 + $0x118] sm:$0xff]  ;;  %v4693_v8 = vpack.c.bf16 %v4172_v4, %v4171_v3 }
0x1305   : > { %v3690_v5 = vpop.permute.xlu1 %3689 }
0x1306   : > { %v3704_v11 = vsel %vm1895_vm7, %v3703_v10, %v3690_v5  ;;  %v4691_v5 = vpack.c.bf16 %v4154_v2, %v4153_v1  ;;  %v4156_v10 = vld [vmem:[%s6016_s8 + $0x128] sm:$0xff]  ;;  %v3898_v1 = vrot.slane %v5782_v57, %v5130_v36 }
0x1309   : > { %v3694_v9 = vpop.permute.xlu0 %3693 }
0x130a   : > { %v3705_v12 = vsel %vm1897_vm8, %v3704_v11, %v3694_v9  ;;  %v4155_v9 = vld [vmem:[%s6016_s8 + $0x120] sm:$0xff]  ;;  %v4173_v11 = vld [vmem:[%s6016_s8 + $0x1b0] sm:$0xff] }
0x130d   : > { %v3698_v24 = vpop.permute.xlu1 %3697 }
0x130e   : > { %v3706_v14 = vsel %vm1899_vm9, %v3705_v12, %v3698_v24  ;;  %v4174_v12 = vld [vmem:[%s6016_s8 + $0x1b8] sm:$0xff]  ;;  %v4695_v24 = vpack.c.bf16 %v4156_v10, %v4155_v9 }
0x130f   : > { %4563 = vmatmul.mubr.msk.f32.vlgmr.msra.gmra.mrb[28].mxu0 %vm461_vm0, %v3706_v14  ;;  %v4697_v14 = vpack.c.bf16 %v4174_v12, %v4173_v11 }
0x1310   : > { %4688 = vmatpush3.bf16.msra.mxu0 %v4687_v62 }
0x1311   : > { %4690 = vmatprep.subr.bf16.mxu0 %v4689_v63 }
0x1314   : > { %4692 = vmatpush3.bf16.msra.mxu0 %v4691_v5 }
0x1315   : > { %4694 = vmatprep.subr.bf16.mxu0 %v4693_v8 }
0x1318   : > { %4696 = vmatpush3.bf16.msra.mxu0 %v4695_v24 }
0x1319   : > { %4698 = vmatprep.subr.bf16.mxu0 %v4697_v14 }
0x13e2   : > { %v3780_v15 = vpop.f32.mrb[28].mxu0 }
0x13e3   : > { %v3781_v16 = vadd.f32 %v3780_v15, %v3710_v13  ;;  %v4564_v17 = vpop.f32.mrb[29].mxu0  ;;  %v4157_v13 = vld [vmem:[%s6016_s8 + $0x130] sm:$0xff]  ;;  %v4158_v15 = vld [vmem:[%s6016_s8 + $0x138] sm:$0xff] }
0x13e4   : > { %v4176_v17 = vld [vmem:[%s6016_s8 + $0x1c8] sm:$0xff] }
0x13e5   : > { %v3784_v18 = vadd.f32 %v3781_v16, %v5581_v6  ;;  %v4137_v6 = vld [vmem:[%s6014_s6 + $0x98] sm:$0xff]  ;;  %v4175_v16 = vld [vmem:[%s6016_s8 + $0x1c0] sm:$0xff] }
0x13e6   : > { %v4669_v28 = vpack.c.bf16 %v4137_v6, %v4135_v26 }
0x13e7   : > { %v3785_v19 = vsel %vm461_vm0, %v3784_v18, 0.0 }
0x13e8   : > { %3786 = vadd.xlane.f32.xlu0 %v3785_v19  ;;  %4670 = vmatprep.subr.bf16.mxu1 %v4669_v28  ;;  %v4701_v19 = vpack.c.bf16 %v4176_v17, %v4175_v16  ;;  %v4161_v28 = vld [vmem:[%s6016_s8 + $0x150] sm:$0xff]  ;;  %v3991_v17 = vrot.slane %v5782_v57, %v2185_v39 }
0x13e9   : > { %4672 = vmatpush1.bf16.msra.mxu1 %v4671_v31  ;;  %v4180_v31 = vld [vmem:[%s6016_s8 + $0x1e8] sm:$0xff]  ;;  %v4707_v32 = vpack.c.bf16 %v4162_v48, %v4161_v28 }
0x13ea   : > { %4674 = vmatprep.subr.bf16.mxu1 %v4673_v34  ;;  %v4709_v33 = vpack.c.bf16 %v4180_v31, %v4179_v40 }
0x13ed   : > { %4676 = vmatpush1.bf16.msra.mxu1 %v4675_v37  ;;  %v3801_v37 = vrot.slane %v5782_v57, %v1995_v54 }
0x13ee   : > { %4678 = vmatprep.subr.bf16.mxu1 %v4677_v42  ;;  %v3806_v42 = vrot.slane %v5782_v57, %v2000_v55  ;;  %v4182_v55 = vld [vmem:[%s6016_s8 + $0x1f8] sm:$0xff] }
0x13f1   : > { %4680 = vmatpush1.bf16.msra.mxu1 %v4679_v44  ;;  %v4163_v44 = vld [vmem:[%s6016_s8 + $0x160] sm:$0xff] }
0x13f2   : > { %4682 = vmatprep.subr.bf16.mxu1 %v4681_v47  ;;  %v4711_v54 = vpack.c.bf16 %v4164_v45, %v4163_v44  ;;  %v4165_v47 = vld [vmem:[%s6016_s8 + $0x170] sm:$0xff] }
0x13f3   : > { %v4715_v50 = vpack.c.bf16 %v4166_v49, %v4165_v47 }
0x13f5   : > { %4684 = vmatpush1.bf16.msra.mxu1 %v4683_v52  ;;  %v4150_v52 = vld [vmem:[%s6015_s7 + $0x2] sm:$0x3] }
0x13f6   : > { %v3812_v53 = vrot.slane %v4150_v52, %v5107_v30  ;;  %v3816_v56 = vrot.slane %v4150_v52, %v5130_v36  ;;  %v3986_v36 = vrot.slane %v5782_v57, %v2180_v0 }
0x1475   : > { %v3787_v20 = vpop.xlane.xlu0 %3786 }
0x1476   : > { %v3788_v21 = vmul.f32 0.015625, %v3787_v20  ;;  %v4159_v20 = vld [vmem:[%s6016_s8 + $0x140] sm:$0xff] }
0x1478   : > { %v5788_v22 = vsub.f32 %v3784_v18, %v3788_v21  ;;  %v4699_v18 = vpack.c.bf16 %v4158_v15, %v4157_v13  ;;  %v4160_v21 = vld [vmem:[%s6016_s8 + $0x148] sm:$0xff] }
0x1479   : > { %v4703_v26 = vpack.c.bf16 %v4160_v21, %v4159_v20 }
0x147a   : > { %v3790_v23 = vmul.f32 %v5788_v22, %v5788_v22  ;;  %4700 = vmatpush3.bf16.msra.mxu0 %v4699_v18 }
0x147b   : > { %4702 = vmatprep.subr.bf16.mxu0 %v4701_v19 }
0x147c   : > { %v3791_v25 = vsel %vm461_vm0, %v3790_v23, 0.0  ;;  %v4177_v23 = vld [vmem:[%s6016_s8 + $0x1d0] sm:$0xff] }
0x147d   : > { %3792 = vadd.xlane.f32.xlu1 %v3791_v25  ;;  %v4178_v25 = vld [vmem:[%s6016_s8 + $0x1d8] sm:$0xff] }
0x147e   : > { %v4705_v6 = vpack.c.bf16 %v4178_v25, %v4177_v23  ;;  %4704 = vmatpush3.bf16.msra.mxu0 %v4703_v26 }
0x1480   : > { %4706 = vmatprep.subr.bf16.mxu0 %v4705_v6 }
0x1482   : > { %4708 = vmatpush3.bf16.msra.mxu0 %v4707_v32 }
0x1483   : > { %4710 = vmatprep.subr.bf16.mxu0 %v4709_v33 }
0x1486   : > { %4712 = vmatpush3.bf16.msra.mxu0 %v4711_v54 }
0x150a   : > { %v3793_v34 = vpop.xlane.xlu1 %3792 }
0x150b   : > { %v3794_v35 = vmul.f32 0.015625, %v3793_v34 }
0x150d   : > { %v3795_v7 = vadd.f32 1e-05, %v3794_v35 }
0x150f   : > { %4843 = vrsqrt.f32 %v3795_v7 }
0x1519   : > { %v4844_v38 = vpop.eup %4843 }
0x151a   : > { %v3797_v41 = vmul.f32 %v4844_v38, %v5788_v22  ;;  %v4181_v22 = vld [vmem:[%s6016_s8 + $0x1f0] sm:$0xff] }
0x151b   : > { %v4713_v46 = vpack.c.bf16 %v4182_v55, %v4181_v22 }
0x151c   : > { %v3802_v43 = vmul.f32 %v3801_v37, %v3797_v41 }
0x151d   : > { %4714 = vmatprep.subr.bf16.mxu0 %v4713_v46 }
0x151e   : > { %v3807_v27 = vadd.f32 %v3806_v42, %v3802_v43  ;;  %4716 = vmatpush3.bf16.msra.mxu0 %v4715_v50 }
0x1520   : > { %4210 = vmatmul.mubr.msk.f32.vlgmr.msra.gmra.mrb[46].mxu1 %vm461_vm0, %v3807_v27 }
0x15f3   : > { %v3888_v51 = vpop.f32.mrb[46].mxu1 }
0x15f4   : > { %v3889_v58 = vadd.f32 %v3888_v51, %v3812_v53  ;;  %v3890_v59 = vpop.f32.mrb[47].mxu1 }
0x15f5   : > { %v3891_v60 = vadd.f32 %v3890_v59, %v3816_v56 }
0x15f6   : > { %v3893_v62 = vmax.f32 %v3889_v58, 0.0 }
0x15f7   : > { %v3894_v61 = vmax.f32 %v3891_v60, 0.0 }
0x15f9   : > { %3963 = vmatprep.mubr.f32.mxu0 %v3894_v61 }
0x15fa   : > { %3964 = vmatmul.mubr.f32.vlgmr.msra.gmra.mrb[30].mxu0 %v3893_v62 }
0x16cd   : > { %v4364_v63 = vpop.f32.mrb[30].mxu0 }
0x16ce   : > { %v4365_v2 = vpop.f32.mrb[31].mxu0 }
0x16cf   : > { %v4366_v3 = vadd.f32 %v4365_v2, %v4364_v63 }
0x16d1   : > { %v3966_v4 = vadd.f32 %v4366_v3, %v3898_v1 }
0x16d3   : > { %v3969_v5 = vadd.f32 %v3966_v4, %v3807_v27 }
0x16d5   : > { %v3970_v30 = vsel %vm461_vm0, %v3969_v5, 0.0 }
0x16d6   : > { %3971 = vadd.xlane.f32.xlu0 %v3970_v30 }
0x1763   : > { %v3972_v8 = vpop.xlane.xlu0 %3971 }
0x1764   : > { %v3973_v9 = vmul.f32 0.015625, %v3972_v8 }
0x1766   : > { %v3974_v10 = vsub.f32 %v3969_v5, %v3973_v9 }
0x1768   : > { %v3975_v11 = vmul.f32 %v3974_v10, %v3974_v10 }
0x176a   : > { %v3976_v12 = vsel %vm461_vm0, %v3975_v11, 0.0 }
0x176b   : > { %3977 = vadd.xlane.f32.xlu0 %v3976_v12 }
0x17f8   : > { %v3978_v24 = vpop.xlane.xlu0 %3977 }
0x17f9   : > { %v3979_v14 = vmul.f32 0.015625, %v3978_v24 }
0x17fb   : > { %v3980_v13 = vadd.f32 1e-05, %v3979_v14 }
0x17fd   : > { %4845 = vrsqrt.f32 %v3980_v13 }
0x1807   : > { %v4846_v15 = vpop.eup %4845 }
0x1808   : > { %v3982_v16 = vmul.f32 %v4846_v15, %v3974_v10 }
0x180a   : > { %v3987_v18 = vmul.f32 %v3986_v36, %v3982_v16 }
0x180c   : > { %v3992_v19 = vadd.f32 %v3991_v17, %v3987_v18 }
0x180e   : > { %3993 = vst.msk [vmem:[%s361_s22] sm:$0xff] %vm461_vm0, %v3992_v19 }
0x180f   : > { %4860 = shalt.err (!%p4857_p3)
}
0x1810   : > { %s4861_s26 = scalar_lea.hbm %s5965_s11, 128  ;;  %s4865_s2 = scalar_lea.hbm %s6018_s10, 256 }
0x1811   : > { %p4862_p4 = scmp.ne.s32.totalorder %s5965_s11, %s4861_s26  ;;  %p4866_p9 = scmp.lt.u32.totalorder %s5965_s11, %s6018_s10 }
0x1812   : > { %p4867_p10 = scmp.lt.u32.totalorder %s4865_s2, %s4861_s26  ;;  %p4869_p12 = scmp.lt.u32.totalorder %s4861_s26, %s5965_s11 }
0x1813   : > { %p4863_p7 = pnand %p4862_p4, %p5024_p5 }
0x1814   : > { %p4868_p11 = por %p4867_p10, %p4866_p9 }
0x1815   : > { %p4864_p8 = pneg %p4863_p7 }
0x1816   : > { %p4870_p13 = por %p4869_p12, %p4868_p11 }
0x1818   : > { %p4871_p0 = pnand %p4870_p13, %p4864_p8 }
0x181a   : > { %4874 = shalt.err (!%p4871_p0)
}
0x181b   : > { %4717 = dma.vmem_to_hbm [thread:$0]  (%p5024_p5), %s5967_s30, 128, %s5965_s11, %s3995_s18  }
0x181c PF: > { %p4723_p1 = scmp.ge.s32.totalorder %s4909_s16, 2  ;;  %s4020_s22 = sand.u32 1, %s4897_s13  }
0x181d   : > { %s4021_s21 = scalar_lea.sflag [#allocation3], %s4020_s22 }
0x181e   : > { %p4720_p2 = pnand %p4723_p1, %p5028_p6 }
0x1820   : > { %4892 = dma.done.wait (!%p4720_p2), %s4021_s21, 128  }
0x1821   : > { %4894 = vsyncadd (!%p4720_p2), %s4021_s21, 4294967168  ;;  %s6072_s12 = sld [smem:[#allocation5_spill]]  ;;  %p20_p3 = scmp.ge.s32.totalorder %s5011_s19, 4  }
0x1822   : > { %s6073_s13 = smov %s4901_s14  ;;  %s6074_s14 = smov %s4905_s15 }
0x1823   : > { %s6076_s16 = smov %s5011_s19  ;;  %22 = sbr.rel (!%p20_p3) target bundleno = 7 (0x7), region = 105 }
0x1827   : > { %s6075_s15 = smov %s6072_s12 }
0x182a   :  { %4026 = vsyncpa [#allocation3], 1 }
0x182b   :  { %4028 = vsyncpa [#allocation3 + $0x1], 1 }

</bundles_post_ra>
